<compile_context>
chip_gen: v5e
topology: v5e:2x2
jax: 0.10.0
libtpu: 0.0.40
codegen_flags: <defaults>
</compile_context>

<pallas_src>
import jax
import jax.numpy as jnp
from jax import lax
from jax.experimental import pallas as pl
from jax.experimental.pallas import tpu as pltpu


def _round_up(x, m):
    return ((x + m - 1) // m) * m


def _vmem_capacity_bytes():
    try:
        return int(pltpu.get_tpu_info().vmem_capacity_bytes)
    except Exception:
        return 64 * 2**20  # conservative (v7x per-TC VMEM)


def _make_lstm_kernel(T_total, Tc, needs_mask, unroll):
    """Kernel factory.  Grid = (batch_shard, time_chunk); time chunk axis is serial.

    Refs:
      xw_ref:  (Tc, Bs, 4*Hp) bf16  -- x @ W_ih + b (i/f/o columns pre-scaled by 0.5)
      whh_ref: (Hp, 4*Hp)     bf16  -- recurrent weights (same 0.5 pre-scale on i/f/o)
      wfc_ref: (Hp, out) f32, bfc_ref: (1, out) f32
      logits_ref, probs_ref: (Bs, out) f32 outputs
      h_ref, c_ref: (Bs, Hp) f32 VMEM scratch carried across time chunks
    """

    def kernel(xw_ref, whh_ref, wfc_ref, bfc_ref, logits_ref, probs_ref, h_ref, c_ref):
        t_chunk = pl.program_id(1)
        Hp = whh_ref.shape[0]

        @pl.when(t_chunk == 0)
        def _():
            h_ref[...] = jnp.zeros_like(h_ref)
            c_ref[...] = jnp.zeros_like(c_ref)

        def step(t, carry):
            h, c = carry
            # Only ONE matmul on the serial path; bf16 operands, f32 accumulation.
            gates = (xw_ref[t].astype(jnp.float32)
                     + jnp.dot(h.astype(jnp.bfloat16), whh_ref[...],
                               preferred_element_type=jnp.float32))
            # One wide tanh over the whole (Bs, 4Hp) slab.  i/f/o pre-activations were
            # pre-scaled by 0.5 at pack time, so sigmoid(x) == 0.5*(tanh(x/2)+1) here.
            ta = jnp.tanh(gates)
            i_g = 0.5 * (ta[:, 0 * Hp:1 * Hp] + 1.0)
            f_g = 0.5 * (ta[:, 1 * Hp:2 * Hp] + 1.0)
            g_g = ta[:, 2 * Hp:3 * Hp]
            o_g = 0.5 * (ta[:, 3 * Hp:4 * Hp] + 1.0)
            c_new = f_g * c + i_g * g_g
            h_new = o_g * jnp.tanh(c_new)
            if needs_mask:  # only generated when T was padded up to a chunk multiple
                valid = (t_chunk * Tc + t) < T_total
                h_new = jnp.where(valid, h_new, h)
                c_new = jnp.where(valid, c_new, c)
            return h_new, c_new

        h_last, c_last = lax.fori_loop(0, Tc, step, (h_ref[...], c_ref[...]),
                                       unroll=unroll)
        h_ref[...] = h_last
        c_ref[...] = c_last

        @pl.when(t_chunk == pl.num_programs(1) - 1)
        def _():
            logits = (jnp.dot(h_last, wfc_ref[...],
                              preferred_element_type=jnp.float32) + bfc_ref[...])
            logits_ref[...] = logits
            m = jnp.max(logits, axis=-1, keepdims=True)
            e = jnp.exp(logits - m)
            probs_ref[...] = e / jnp.sum(e, axis=-1, keepdims=True)  # exact divide

    return kernel


def lstm_policy_forward(x, kparams, model="actor"):
    """x: (B, T, in_dim) float32 (batch_first, like the PyTorch module).
    kparams: output of pack_params().  Returns softmax (actor) or logits (critic)
    with the same squeeze semantics as the PyTorch module."""
    B, T, in_dim = x.shape
    Hp = kparams["w_hh"].shape[0]          # padded hidden (multiple of 128)
    out_dim = kparams["w_fc"].shape[1]
    x = x.astype(jnp.float32)

    # --- batch padding / optional 2-core batch sharding -------------------------
    nb = 2 if B >= 16 and B % 2 == 0 else 1          # v7x: split batch across 2 TCs
    Bp = _round_up(B, 8 * nb)                        # full sublane tiles per shard
    if Bp != B:
        x = jnp.pad(x, ((0, Bp - B), (0, 0), (0, 0)))
    Bs = Bp // nb

    # --- hoisted input projection (one big matmul), bias folded in, bf16 --------
    # "->tbg" folds the batch_first -> time-major change into the matmul output.
    xw = (jnp.einsum("bti,ig->tbg", x, kparams["w_ih"]) + kparams["b"])
    xw = xw.astype(jnp.bfloat16)                     # (T, Bp, 4*Hp)

    # --- time chunking so xw need not be fully resident --------------------------
    bytes_per_step = Bp * 4 * Hp * 2                 # bf16
    Tc = int(max(1, min(T, (8 * 2**20) // max(1, bytes_per_step))))
    n_chunks = -(-T // Tc)
    Tpad = n_chunks * Tc
    if Tpad != T:
        xw = jnp.pad(xw, ((0, Tpad - T), (0, 0), (0, 0)))
    needs_mask = (Tpad != T)

    # --- VMEM budget --------------------------------------------------------------
    footprint = (2 * Tc * Bs * 4 * Hp * 2            # double-buffered xw chunk
                 + 2 * Hp * 4 * Hp * 2               # w_hh (bf16)
                 + 2 * Hp * out_dim * 4 + 2 * out_dim * 4
                 + 2 * 2 * Bs * out_dim * 4          # outputs
                 + 2 * Bs * Hp * 4)                  # h/c scratch
    cap = _vmem_capacity_bytes()
    vmem_limit = int(max(16 * 2**20,
                         min(cap - 16 * 2**20, max(32 * 2**20, 2 * footprint))))

    kernel = _make_lstm_kernel(T, Tc, needs_mask, unroll=min(8, Tc))

    logits, probs = pl.pallas_call(
        kernel,
        out_shape=(
            jax.ShapeDtypeStruct((Bp, out_dim), jnp.float32),   # fc logits (critic)
            jax.ShapeDtypeStruct((Bp, out_dim), jnp.float32),   # softmax   (actor)
        ),
        grid_spec=pltpu.PrefetchScalarGridSpec(
            num_scalar_prefetch=0,
            grid=(nb, n_chunks),
            in_specs=[
                pl.BlockSpec((Tc, Bs, 4 * Hp), lambda b, t: (t, b, 0)),   # xw chunks
                pl.BlockSpec((Hp, 4 * Hp), lambda b, t: (0, 0)),          # w_hh (resident)
                pl.BlockSpec((Hp, out_dim), lambda b, t: (0, 0)),         # w_fc
                pl.BlockSpec((1, out_dim), lambda b, t: (0, 0)),          # b_fc
            ],
            out_specs=(pl.BlockSpec((Bs, out_dim), lambda b, t: (b, 0)),
                       pl.BlockSpec((Bs, out_dim), lambda b, t: (b, 0))),
            scratch_shapes=[pltpu.VMEM((Bs, Hp), jnp.float32),            # h carry
                            pltpu.VMEM((Bs, Hp), jnp.float32)],           # c carry
        ),
        compiler_params=pltpu.CompilerParams(
            dimension_semantics=("parallel", "arbitrary"),
            vmem_limit_bytes=vmem_limit),
    )(xw, kparams["w_hh"], kparams["w_fc"], kparams["b_fc"])

    logits = logits[:B]
    probs = probs[:B]
    if model == "actor":
        return jnp.squeeze(probs)                    # torch .squeeze()
    # torch .squeeze(1): drop dim 1 only if it is size 1
    return jnp.squeeze(logits, axis=1) if out_dim == 1 else logits


def init_params(key, in_dim, hidden_size, out_dim):
    """PyTorch-layout params, uniform(-1/sqrt(H), 1/sqrt(H)) like nn.LSTM / nn.Linear."""
    ks = jax.random.split(key, 6)
    H = hidden_size
    s = float(H) ** -0.5
    return {
        "w_ih": jax.random.uniform(ks[0], (4 * H, in_dim), jnp.float32, -s, s),
        "w_hh": jax.random.uniform(ks[1], (4 * H, H), jnp.float32, -s, s),
        "b_ih": jax.random.uniform(ks[2], (4 * H,), jnp.float32, -s, s),
        "b_hh": jax.random.uniform(ks[3], (4 * H,), jnp.float32, -s, s),
        "w_fc": jax.random.uniform(ks[4], (out_dim, H), jnp.float32, -s, s),
        "b_fc": jax.random.uniform(ks[5], (out_dim,), jnp.float32, -s, s),
    }


def pack_params(tp, hidden_size):
    """Repack PyTorch-layout weights for the kernel:
       * transpose to matmul layouts,
       * zero-pad the hidden dim per gate to a multiple of 128 lanes (exact),
       * pre-scale the i/f/o gate columns by 0.5 (sigmoid-via-tanh identity),
       * store the recurrent weights in bf16 (MXU operand)."""
    H = hidden_size
    Hp = _round_up(H, 128)
    # PyTorch gate order: i, f, g(cell), o.  g keeps its tanh, so no pre-scale there.
    gate_scale = jnp.array([0.5, 0.5, 1.0, 0.5], jnp.float32)[:, None]

    def pack_gate_cols(w):                         # (..., 4H) -> (..., 4Hp), scaled
        lead = w.shape[:-1]
        w4 = w.reshape(lead + (4, H)) * gate_scale
        w4 = jnp.pad(w4, [(0, 0)] * len(lead) + [(0, 0), (0, Hp - H)])
        return w4.reshape(lead + (4 * Hp,))

    w_ih = pack_gate_cols(tp["w_ih"].T)                                  # (in, 4Hp) f32
    w_hh = jnp.pad(pack_gate_cols(tp["w_hh"].T), [(0, Hp - H), (0, 0)])  # (Hp, 4Hp)
    b = pack_gate_cols((tp["b_ih"] + tp["b_hh"])[None, :])               # (1, 4Hp) f32
    w_fc = jnp.pad(tp["w_fc"].T, [(0, Hp - H), (0, 0)])                  # (Hp, out) f32
    b_fc = tp["b_fc"][None, :]                                           # (1, out) f32
    return {"w_ih": w_ih, "w_hh": w_hh.astype(jnp.bfloat16),
            "b": b, "w_fc": w_fc, "b_fc": b_fc}


def _reference(x, tp, model):
    """Pure-JAX f32 reference (lax.scan LSTM) using the unpadded PyTorch-layout params."""
    H = tp["w_hh"].shape[1]
    B = x.shape[0]
    w_ih, w_hh = tp["w_ih"].T, tp["w_hh"].T
    b = tp["b_ih"] + tp["b_hh"]

    def step(carry, x_t):
        h, c = carry
        g = x_t @ w_ih + h @ w_hh + b
        i = jax.nn.sigmoid(g[:, 0 * H:1 * H])
        f = jax.nn.sigmoid(g[:, 1 * H:2 * H])
        gg = jnp.tanh(g[:, 2 * H:3 * H])
        o = jax.nn.sigmoid(g[:, 3 * H:4 * H])
        c = f * c + i * gg
        h = o * jnp.tanh(c)
        return (h, c), None

    h0 = jnp.zeros((B, H), jnp.float32)
    (h_last, _), _ = lax.scan(step, (h0, h0), jnp.transpose(x, (1, 0, 2)))
    logits = h_last @ tp["w_fc"].T + tp["b_fc"]
    if model == "actor":
        return jnp.squeeze(jax.nn.softmax(logits, axis=-1))
    return jnp.squeeze(logits, axis=1) if logits.shape[1] == 1 else logits


if __name__ == "__main__":
    B, T, IN_DIM, HIDDEN, OUT_DIM = 2, 8, 16, 64, 4

    key = jax.random.PRNGKey(0)
    k_x, k_p = jax.random.split(key)
    x = jax.random.normal(k_x, (B, T, IN_DIM), jnp.float32)
    torch_params = init_params(k_p, IN_DIM, HIDDEN, OUT_DIM)
    kparams = pack_params(torch_params, HIDDEN)

    fwd = jax.jit(lstm_policy_forward, static_argnames=("model",))
    actor_out = jax.block_until_ready(fwd(x, kparams, model="actor"))
    critic_out = jax.block_until_ready(fwd(x, kparams, model="critic"))

    ref_actor = _reference(x, torch_params, "actor")
    ref_critic = _reference(x, torch_params, "critic")

    assert actor_out.shape == (B, OUT_DIM)
    assert critic_out.shape == (B, OUT_DIM)
    # The kernel uses bf16 MXU operands (W_hh, h, xw) with f32 accumulation, so
    # compare against the pure-f32 reference with a bf16-rounding-scale tolerance.
    assert jnp.allclose(critic_out, ref_critic, atol=2e-2, rtol=2e-2)
    assert jnp.allclose(actor_out, ref_actor, atol=2e-2, rtol=2e-2)

    print("KERNEL_OK")
</pallas_src>

<mosaic_0001>
module attributes {stable_mosaic.version = 11 : i64} {
  func.func @kernel(%arg0: i32, %arg1: i32, %arg2: memref<8x8x512xbf16, #tpu.memory_space<vmem>>, %arg3: memref<128x512xbf16, #tpu.memory_space<vmem>>, %arg4: memref<128x4xf32, #tpu.memory_space<vmem>>, %arg5: memref<1x4xf32, #tpu.memory_space<vmem>>, %arg6: memref<8x4xf32, #tpu.memory_space<vmem>>, %arg7: memref<8x4xf32, #tpu.memory_space<vmem>>, %arg8: memref<8x128xf32, #tpu.memory_space<vmem>>, %arg9: memref<8x128xf32, #tpu.memory_space<vmem>>) attributes {dimension_semantics = [#tpu.dimension_semantics<parallel>, #tpu.dimension_semantics<arbitrary>], iteration_bounds = array<i64: 1, 1>, scalar_prefetch = 0 : i64, scratch_operands = 2 : i64, tpu.core_type = #tpu.core_type<tc>, window_params = [{transform_indices = @transform_0, window_bounds = array<i64: 8, 8, 512>}, {pipeline_mode = #tpu.pipeline_mode<synchronous>, transform_indices = @transform_1, window_bounds = array<i64: 128, 512>}, {pipeline_mode = #tpu.pipeline_mode<synchronous>, transform_indices = @transform_2, window_bounds = array<i64: 128, 4>}, {pipeline_mode = #tpu.pipeline_mode<synchronous>, transform_indices = @transform_3, window_bounds = array<i64: 1, 4>}, {transform_indices = @transform_4, window_bounds = array<i64: 8, 4>}, {transform_indices = @transform_5, window_bounds = array<i64: 8, 4>}]} {
    %c0_i32 = arith.constant 0 : i32
    %0 = arith.cmpi eq, %arg1, %c0_i32 : i32
    %1 = arith.extui %0 : i1 to i32
    %c0_i32_0 = arith.constant 0 : i32
    %2 = arith.cmpi ne, %1, %c0_i32_0 : i32
    scf.if %2 {
      %cst_98 = arith.constant 0.000000e+00 : f32
      %250 = vector.broadcast %cst_98 : f32 to vector<8x128xf32>
      %c0_99 = arith.constant 0 : index
      %c0_100 = arith.constant 0 : index
      %251 = vector.load %arg8[%c0_99, %c0_100] : memref<8x128xf32, #tpu.memory_space<vmem>>, vector<8x128xf32>
      tpu.vector_store %arg8[%c0_99, %c0_100], %250 {strides = array<i32>} : memref<8x128xf32, #tpu.memory_space<vmem>>, vector<8x128xf32>,
      %cst_101 = arith.constant 0.000000e+00 : f32
      %252 = vector.broadcast %cst_101 : f32 to vector<8x128xf32>
      %c0_102 = arith.constant 0 : index
      %c0_103 = arith.constant 0 : index
      %253 = vector.load %arg9[%c0_102, %c0_103] : memref<8x128xf32, #tpu.memory_space<vmem>>, vector<8x128xf32>
      tpu.vector_store %arg9[%c0_102, %c0_103], %252 {strides = array<i32>} : memref<8x128xf32, #tpu.memory_space<vmem>>, vector<8x128xf32>,
    } else {
    }
    %c0 = arith.constant 0 : index
    %c0_1 = arith.constant 0 : index
    %3 = vector.load %arg8[%c0, %c0_1] : memref<8x128xf32, #tpu.memory_space<vmem>>, vector<8x128xf32>
    %c0_2 = arith.constant 0 : index
    %c0_3 = arith.constant 0 : index
    %4 = vector.load %arg9[%c0_2, %c0_3] : memref<8x128xf32, #tpu.memory_space<vmem>>, vector<8x128xf32>
    %c0_i32_4 = arith.constant 0 : i32
    %5 = arith.index_cast %c0_i32_4 : i32 to index
    %c0_5 = arith.constant 0 : index
    %c0_6 = arith.constant 0 : index
    %6 = vector.load %arg2[%5, %c0_5, %c0_6] : memref<8x8x512xbf16, #tpu.memory_space<vmem>>, vector<1x8x512xbf16>
    %7 = vector.shape_cast %6 : vector<1x8x512xbf16> to vector<8x512xbf16>
    %8 = arith.extf %7 : vector<8x512xbf16> to vector<8x512xf32>
    %9 = arith.truncf %3 : vector<8x128xf32> to vector<8x128xbf16>
    %c0_7 = arith.constant 0 : index
    %c0_8 = arith.constant 0 : index
    %10 = vector.load %arg3[%c0_7, %c0_8] : memref<128x512xbf16, #tpu.memory_space<vmem>>, vector<128x512xbf16>
    %cst = arith.constant dense<0.000000e+00> : vector<8x512xf32>
    %11 = tpu.matmul %9, %10, %cst {dimension_numbers = #tpu.dot_dimension_numbers<[1], [0], [0], [1], [0, 0, 1, 1], [], []>} : vector<8x128xbf16>, vector<128x512xbf16>, vector<8x512xf32> -> vector<8x512xf32>
    %12 = arith.addf %8, %11 : vector<8x512xf32>
    %13 = math.tanh %12 : vector<8x512xf32>
    %14 = vector.extract_strided_slice %13 {offsets = [0, 0], sizes = [8, 128], strides = [1, 1]} : vector<8x512xf32> to vector<8x128xf32>
    %cst_9 = arith.constant 1.000000e+00 : f32
    %15 = vector.broadcast %cst_9 : f32 to vector<8x128xf32>
    %16 = arith.addf %14, %15 : vector<8x128xf32>
    %cst_10 = arith.constant 5.000000e-01 : f32
    %17 = vector.broadcast %cst_10 : f32 to vector<8x128xf32>
    %18 = arith.mulf %17, %16 : vector<8x128xf32>
    %19 = vector.extract_strided_slice %13 {offsets = [0, 128], sizes = [8, 128], strides = [1, 1]} : vector<8x512xf32> to vector<8x128xf32>
    %cst_11 = arith.constant 1.000000e+00 : f32
    %20 = vector.broadcast %cst_11 : f32 to vector<8x128xf32>
    %21 = arith.addf %19, %20 : vector<8x128xf32>
    %cst_12 = arith.constant 5.000000e-01 : f32
    %22 = vector.broadcast %cst_12 : f32 to vector<8x128xf32>
    %23 = arith.mulf %22, %21 : vector<8x128xf32>
    %24 = vector.extract_strided_slice %13 {offsets = [0, 256], sizes = [8, 128], strides = [1, 1]} : vector<8x512xf32> to vector<8x128xf32>
    %25 = vector.extract_strided_slice %13 {offsets = [0, 384], sizes = [8, 128], strides = [1, 1]} : vector<8x512xf32> to vector<8x128xf32>
    %cst_13 = arith.constant 1.000000e+00 : f32
    %26 = vector.broadcast %cst_13 : f32 to vector<8x128xf32>
    %27 = arith.addf %25, %26 : vector<8x128xf32>
    %cst_14 = arith.constant 5.000000e-01 : f32
    %28 = vector.broadcast %cst_14 : f32 to vector<8x128xf32>
    %29 = arith.mulf %28, %27 : vector<8x128xf32>
    %30 = arith.mulf %23, %4 : vector<8x128xf32>
    %31 = arith.mulf %18, %24 : vector<8x128xf32>
    %32 = arith.addf %30, %31 : vector<8x128xf32>
    %33 = math.tanh %32 : vector<8x128xf32>
    %34 = arith.mulf %29, %33 : vector<8x128xf32>
    %c1_i32 = arith.constant 1 : i32
    %35 = arith.index_cast %c1_i32 : i32 to index
    %c0_15 = arith.constant 0 : index
    %c0_16 = arith.constant 0 : index
    %36 = vector.load %arg2[%35, %c0_15, %c0_16] : memref<8x8x512xbf16, #tpu.memory_space<vmem>>, vector<1x8x512xbf16>
    %37 = vector.shape_cast %36 : vector<1x8x512xbf16> to vector<8x512xbf16>
    %38 = arith.extf %37 : vector<8x512xbf16> to vector<8x512xf32>
    %39 = arith.truncf %34 : vector<8x128xf32> to vector<8x128xbf16>
    %c0_17 = arith.constant 0 : index
    %c0_18 = arith.constant 0 : index
    %40 = vector.load %arg3[%c0_17, %c0_18] : memref<128x512xbf16, #tpu.memory_space<vmem>>, vector<128x512xbf16>
    %cst_19 = arith.constant dense<0.000000e+00> : vector<8x512xf32>
    %41 = tpu.matmul %39, %40, %cst_19 {dimension_numbers = #tpu.dot_dimension_numbers<[1], [0], [0], [1], [0, 0, 1, 1], [], []>} : vector<8x128xbf16>, vector<128x512xbf16>, vector<8x512xf32> -> vector<8x512xf32>
    %42 = arith.addf %38, %41 : vector<8x512xf32>
    %43 = math.tanh %42 : vector<8x512xf32>
    %44 = vector.extract_strided_slice %43 {offsets = [0, 0], sizes = [8, 128], strides = [1, 1]} : vector<8x512xf32> to vector<8x128xf32>
    %cst_20 = arith.constant 1.000000e+00 : f32
    %45 = vector.broadcast %cst_20 : f32 to vector<8x128xf32>
    %46 = arith.addf %44, %45 : vector<8x128xf32>
    %cst_21 = arith.constant 5.000000e-01 : f32
    %47 = vector.broadcast %cst_21 : f32 to vector<8x128xf32>
    %48 = arith.mulf %47, %46 : vector<8x128xf32>
    %49 = vector.extract_strided_slice %43 {offsets = [0, 128], sizes = [8, 128], strides = [1, 1]} : vector<8x512xf32> to vector<8x128xf32>
    %cst_22 = arith.constant 1.000000e+00 : f32
    %50 = vector.broadcast %cst_22 : f32 to vector<8x128xf32>
    %51 = arith.addf %49, %50 : vector<8x128xf32>
    %cst_23 = arith.constant 5.000000e-01 : f32
    %52 = vector.broadcast %cst_23 : f32 to vector<8x128xf32>
    %53 = arith.mulf %52, %51 : vector<8x128xf32>
    %54 = vector.extract_strided_slice %43 {offsets = [0, 256], sizes = [8, 128], strides = [1, 1]} : vector<8x512xf32> to vector<8x128xf32>
    %55 = vector.extract_strided_slice %43 {offsets = [0, 384], sizes = [8, 128], strides = [1, 1]} : vector<8x512xf32> to vector<8x128xf32>
    %cst_24 = arith.constant 1.000000e+00 : f32
    %56 = vector.broadcast %cst_24 : f32 to vector<8x128xf32>
    %57 = arith.addf %55, %56 : vector<8x128xf32>
    %cst_25 = arith.constant 5.000000e-01 : f32
    %58 = vector.broadcast %cst_25 : f32 to vector<8x128xf32>
    %59 = arith.mulf %58, %57 : vector<8x128xf32>
    %60 = arith.mulf %53, %32 : vector<8x128xf32>
    %61 = arith.mulf %48, %54 : vector<8x128xf32>
    %62 = arith.addf %60, %61 : vector<8x128xf32>
    %63 = math.tanh %62 : vector<8x128xf32>
    %64 = arith.mulf %59, %63 : vector<8x128xf32>
    %c2_i32 = arith.constant 2 : i32
    %65 = arith.index_cast %c2_i32 : i32 to index
    %c0_26 = arith.constant 0 : index
    %c0_27 = arith.constant 0 : index
    %66 = vector.load %arg2[%65, %c0_26, %c0_27] : memref<8x8x512xbf16, #tpu.memory_space<vmem>>, vector<1x8x512xbf16>
    %67 = vector.shape_cast %66 : vector<1x8x512xbf16> to vector<8x512xbf16>
    %68 = arith.extf %67 : vector<8x512xbf16> to vector<8x512xf32>
    %69 = arith.truncf %64 : vector<8x128xf32> to vector<8x128xbf16>
    %c0_28 = arith.constant 0 : index
    %c0_29 = arith.constant 0 : index
    %70 = vector.load %arg3[%c0_28, %c0_29] : memref<128x512xbf16, #tpu.memory_space<vmem>>, vector<128x512xbf16>
    %cst_30 = arith.constant dense<0.000000e+00> : vector<8x512xf32>
    %71 = tpu.matmul %69, %70, %cst_30 {dimension_numbers = #tpu.dot_dimension_numbers<[1], [0], [0], [1], [0, 0, 1, 1], [], []>} : vector<8x128xbf16>, vector<128x512xbf16>, vector<8x512xf32> -> vector<8x512xf32>
    %72 = arith.addf %68, %71 : vector<8x512xf32>
    %73 = math.tanh %72 : vector<8x512xf32>
    %74 = vector.extract_strided_slice %73 {offsets = [0, 0], sizes = [8, 128], strides = [1, 1]} : vector<8x512xf32> to vector<8x128xf32>
    %cst_31 = arith.constant 1.000000e+00 : f32
    %75 = vector.broadcast %cst_31 : f32 to vector<8x128xf32>
    %76 = arith.addf %74, %75 : vector<8x128xf32>
    %cst_32 = arith.constant 5.000000e-01 : f32
    %77 = vector.broadcast %cst_32 : f32 to vector<8x128xf32>
    %78 = arith.mulf %77, %76 : vector<8x128xf32>
    %79 = vector.extract_strided_slice %73 {offsets = [0, 128], sizes = [8, 128], strides = [1, 1]} : vector<8x512xf32> to vector<8x128xf32>
    %cst_33 = arith.constant 1.000000e+00 : f32
    %80 = vector.broadcast %cst_33 : f32 to vector<8x128xf32>
    %81 = arith.addf %79, %80 : vector<8x128xf32>
    %cst_34 = arith.constant 5.000000e-01 : f32
    %82 = vector.broadcast %cst_34 : f32 to vector<8x128xf32>
    %83 = arith.mulf %82, %81 : vector<8x128xf32>
    %84 = vector.extract_strided_slice %73 {offsets = [0, 256], sizes = [8, 128], strides = [1, 1]} : vector<8x512xf32> to vector<8x128xf32>
    %85 = vector.extract_strided_slice %73 {offsets = [0, 384], sizes = [8, 128], strides = [1, 1]} : vector<8x512xf32> to vector<8x128xf32>
    %cst_35 = arith.constant 1.000000e+00 : f32
    %86 = vector.broadcast %cst_35 : f32 to vector<8x128xf32>
    %87 = arith.addf %85, %86 : vector<8x128xf32>
    %cst_36 = arith.constant 5.000000e-01 : f32
    %88 = vector.broadcast %cst_36 : f32 to vector<8x128xf32>
    %89 = arith.mulf %88, %87 : vector<8x128xf32>
    %90 = arith.mulf %83, %62 : vector<8x128xf32>
    %91 = arith.mulf %78, %84 : vector<8x128xf32>
    %92 = arith.addf %90, %91 : vector<8x128xf32>
    %93 = math.tanh %92 : vector<8x128xf32>
    %94 = arith.mulf %89, %93 : vector<8x128xf32>
    %c3_i32 = arith.constant 3 : i32
    %95 = arith.index_cast %c3_i32 : i32 to index
    %c0_37 = arith.constant 0 : index
    %c0_38 = arith.constant 0 : index
    %96 = vector.load %arg2[%95, %c0_37, %c0_38] : memref<8x8x512xbf16, #tpu.memory_space<vmem>>, vector<1x8x512xbf16>
    %97 = vector.shape_cast %96 : vector<1x8x512xbf16> to vector<8x512xbf16>
    %98 = arith.extf %97 : vector<8x512xbf16> to vector<8x512xf32>
    %99 = arith.truncf %94 : vector<8x128xf32> to vector<8x128xbf16>
    %c0_39 = arith.constant 0 : index
    %c0_40 = arith.constant 0 : index
    %100 = vector.load %arg3[%c0_39, %c0_40] : memref<128x512xbf16, #tpu.memory_space<vmem>>, vector<128x512xbf16>
    %cst_41 = arith.constant dense<0.000000e+00> : vector<8x512xf32>
    %101 = tpu.matmul %99, %100, %cst_41 {dimension_numbers = #tpu.dot_dimension_numbers<[1], [0], [0], [1], [0, 0, 1, 1], [], []>} : vector<8x128xbf16>, vector<128x512xbf16>, vector<8x512xf32> -> vector<8x512xf32>
    %102 = arith.addf %98, %101 : vector<8x512xf32>
    %103 = math.tanh %102 : vector<8x512xf32>
    %104 = vector.extract_strided_slice %103 {offsets = [0, 0], sizes = [8, 128], strides = [1, 1]} : vector<8x512xf32> to vector<8x128xf32>
    %cst_42 = arith.constant 1.000000e+00 : f32
    %105 = vector.broadcast %cst_42 : f32 to vector<8x128xf32>
    %106 = arith.addf %104, %105 : vector<8x128xf32>
    %cst_43 = arith.constant 5.000000e-01 : f32
    %107 = vector.broadcast %cst_43 : f32 to vector<8x128xf32>
    %108 = arith.mulf %107, %106 : vector<8x128xf32>
    %109 = vector.extract_strided_slice %103 {offsets = [0, 128], sizes = [8, 128], strides = [1, 1]} : vector<8x512xf32> to vector<8x128xf32>
    %cst_44 = arith.constant 1.000000e+00 : f32
    %110 = vector.broadcast %cst_44 : f32 to vector<8x128xf32>
    %111 = arith.addf %109, %110 : vector<8x128xf32>
    %cst_45 = arith.constant 5.000000e-01 : f32
    %112 = vector.broadcast %cst_45 : f32 to vector<8x128xf32>
    %113 = arith.mulf %112, %111 : vector<8x128xf32>
    %114 = vector.extract_strided_slice %103 {offsets = [0, 256], sizes = [8, 128], strides = [1, 1]} : vector<8x512xf32> to vector<8x128xf32>
    %115 = vector.extract_strided_slice %103 {offsets = [0, 384], sizes = [8, 128], strides = [1, 1]} : vector<8x512xf32> to vector<8x128xf32>
    %cst_46 = arith.constant 1.000000e+00 : f32
    %116 = vector.broadcast %cst_46 : f32 to vector<8x128xf32>
    %117 = arith.addf %115, %116 : vector<8x128xf32>
    %cst_47 = arith.constant 5.000000e-01 : f32
    %118 = vector.broadcast %cst_47 : f32 to vector<8x128xf32>
    %119 = arith.mulf %118, %117 : vector<8x128xf32>
    %120 = arith.mulf %113, %92 : vector<8x128xf32>
    %121 = arith.mulf %108, %114 : vector<8x128xf32>
    %122 = arith.addf %120, %121 : vector<8x128xf32>
    %123 = math.tanh %122 : vector<8x128xf32>
    %124 = arith.mulf %119, %123 : vector<8x128xf32>
    %c4_i32 = arith.constant 4 : i32
    %125 = arith.index_cast %c4_i32 : i32 to index
    %c0_48 = arith.constant 0 : index
    %c0_49 = arith.constant 0 : index
    %126 = vector.load %arg2[%125, %c0_48, %c0_49] : memref<8x8x512xbf16, #tpu.memory_space<vmem>>, vector<1x8x512xbf16>
    %127 = vector.shape_cast %126 : vector<1x8x512xbf16> to vector<8x512xbf16>
    %128 = arith.extf %127 : vector<8x512xbf16> to vector<8x512xf32>
    %129 = arith.truncf %124 : vector<8x128xf32> to vector<8x128xbf16>
    %c0_50 = arith.constant 0 : index
    %c0_51 = arith.constant 0 : index
    %130 = vector.load %arg3[%c0_50, %c0_51] : memref<128x512xbf16, #tpu.memory_space<vmem>>, vector<128x512xbf16>
    %cst_52 = arith.constant dense<0.000000e+00> : vector<8x512xf32>
    %131 = tpu.matmul %129, %130, %cst_52 {dimension_numbers = #tpu.dot_dimension_numbers<[1], [0], [0], [1], [0, 0, 1, 1], [], []>} : vector<8x128xbf16>, vector<128x512xbf16>, vector<8x512xf32> -> vector<8x512xf32>
    %132 = arith.addf %128, %131 : vector<8x512xf32>
    %133 = math.tanh %132 : vector<8x512xf32>
    %134 = vector.extract_strided_slice %133 {offsets = [0, 0], sizes = [8, 128], strides = [1, 1]} : vector<8x512xf32> to vector<8x128xf32>
    %cst_53 = arith.constant 1.000000e+00 : f32
    %135 = vector.broadcast %cst_53 : f32 to vector<8x128xf32>
    %136 = arith.addf %134, %135 : vector<8x128xf32>
    %cst_54 = arith.constant 5.000000e-01 : f32
    %137 = vector.broadcast %cst_54 : f32 to vector<8x128xf32>
    %138 = arith.mulf %137, %136 : vector<8x128xf32>
    %139 = vector.extract_strided_slice %133 {offsets = [0, 128], sizes = [8, 128], strides = [1, 1]} : vector<8x512xf32> to vector<8x128xf32>
    %cst_55 = arith.constant 1.000000e+00 : f32
    %140 = vector.broadcast %cst_55 : f32 to vector<8x128xf32>
    %141 = arith.addf %139, %140 : vector<8x128xf32>
    %cst_56 = arith.constant 5.000000e-01 : f32
    %142 = vector.broadcast %cst_56 : f32 to vector<8x128xf32>
    %143 = arith.mulf %142, %141 : vector<8x128xf32>
    %144 = vector.extract_strided_slice %133 {offsets = [0, 256], sizes = [8, 128], strides = [1, 1]} : vector<8x512xf32> to vector<8x128xf32>
    %145 = vector.extract_strided_slice %133 {offsets = [0, 384], sizes = [8, 128], strides = [1, 1]} : vector<8x512xf32> to vector<8x128xf32>
    %cst_57 = arith.constant 1.000000e+00 : f32
    %146 = vector.broadcast %cst_57 : f32 to vector<8x128xf32>
    %147 = arith.addf %145, %146 : vector<8x128xf32>
    %cst_58 = arith.constant 5.000000e-01 : f32
    %148 = vector.broadcast %cst_58 : f32 to vector<8x128xf32>
    %149 = arith.mulf %148, %147 : vector<8x128xf32>
    %150 = arith.mulf %143, %122 : vector<8x128xf32>
    %151 = arith.mulf %138, %144 : vector<8x128xf32>
    %152 = arith.addf %150, %151 : vector<8x128xf32>
    %153 = math.tanh %152 : vector<8x128xf32>
    %154 = arith.mulf %149, %153 : vector<8x128xf32>
    %c5_i32 = arith.constant 5 : i32
    %155 = arith.index_cast %c5_i32 : i32 to index
    %c0_59 = arith.constant 0 : index
    %c0_60 = arith.constant 0 : index
    %156 = vector.load %arg2[%155, %c0_59, %c0_60] : memref<8x8x512xbf16, #tpu.memory_space<vmem>>, vector<1x8x512xbf16>
    %157 = vector.shape_cast %156 : vector<1x8x512xbf16> to vector<8x512xbf16>
    %158 = arith.extf %157 : vector<8x512xbf16> to vector<8x512xf32>
    %159 = arith.truncf %154 : vector<8x128xf32> to vector<8x128xbf16>
    %c0_61 = arith.constant 0 : index
    %c0_62 = arith.constant 0 : index
    %160 = vector.load %arg3[%c0_61, %c0_62] : memref<128x512xbf16, #tpu.memory_space<vmem>>, vector<128x512xbf16>
    %cst_63 = arith.constant dense<0.000000e+00> : vector<8x512xf32>
    %161 = tpu.matmul %159, %160, %cst_63 {dimension_numbers = #tpu.dot_dimension_numbers<[1], [0], [0], [1], [0, 0, 1, 1], [], []>} : vector<8x128xbf16>, vector<128x512xbf16>, vector<8x512xf32> -> vector<8x512xf32>
    %162 = arith.addf %158, %161 : vector<8x512xf32>
    %163 = math.tanh %162 : vector<8x512xf32>
    %164 = vector.extract_strided_slice %163 {offsets = [0, 0], sizes = [8, 128], strides = [1, 1]} : vector<8x512xf32> to vector<8x128xf32>
    %cst_64 = arith.constant 1.000000e+00 : f32
    %165 = vector.broadcast %cst_64 : f32 to vector<8x128xf32>
    %166 = arith.addf %164, %165 : vector<8x128xf32>
    %cst_65 = arith.constant 5.000000e-01 : f32
    %167 = vector.broadcast %cst_65 : f32 to vector<8x128xf32>
    %168 = arith.mulf %167, %166 : vector<8x128xf32>
    %169 = vector.extract_strided_slice %163 {offsets = [0, 128], sizes = [8, 128], strides = [1, 1]} : vector<8x512xf32> to vector<8x128xf32>
    %cst_66 = arith.constant 1.000000e+00 : f32
    %170 = vector.broadcast %cst_66 : f32 to vector<8x128xf32>
    %171 = arith.addf %169, %170 : vector<8x128xf32>
    %cst_67 = arith.constant 5.000000e-01 : f32
    %172 = vector.broadcast %cst_67 : f32 to vector<8x128xf32>
    %173 = arith.mulf %172, %171 : vector<8x128xf32>
    %174 = vector.extract_strided_slice %163 {offsets = [0, 256], sizes = [8, 128], strides = [1, 1]} : vector<8x512xf32> to vector<8x128xf32>
    %175 = vector.extract_strided_slice %163 {offsets = [0, 384], sizes = [8, 128], strides = [1, 1]} : vector<8x512xf32> to vector<8x128xf32>
    %cst_68 = arith.constant 1.000000e+00 : f32
    %176 = vector.broadcast %cst_68 : f32 to vector<8x128xf32>
    %177 = arith.addf %175, %176 : vector<8x128xf32>
    %cst_69 = arith.constant 5.000000e-01 : f32
    %178 = vector.broadcast %cst_69 : f32 to vector<8x128xf32>
    %179 = arith.mulf %178, %177 : vector<8x128xf32>
    %180 = arith.mulf %173, %152 : vector<8x128xf32>
    %181 = arith.mulf %168, %174 : vector<8x128xf32>
    %182 = arith.addf %180, %181 : vector<8x128xf32>
    %183 = math.tanh %182 : vector<8x128xf32>
    %184 = arith.mulf %179, %183 : vector<8x128xf32>
    %c6_i32 = arith.constant 6 : i32
    %185 = arith.index_cast %c6_i32 : i32 to index
    %c0_70 = arith.constant 0 : index
    %c0_71 = arith.constant 0 : index
    %186 = vector.load %arg2[%185, %c0_70, %c0_71] : memref<8x8x512xbf16, #tpu.memory_space<vmem>>, vector<1x8x512xbf16>
    %187 = vector.shape_cast %186 : vector<1x8x512xbf16> to vector<8x512xbf16>
    %188 = arith.extf %187 : vector<8x512xbf16> to vector<8x512xf32>
    %189 = arith.truncf %184 : vector<8x128xf32> to vector<8x128xbf16>
    %c0_72 = arith.constant 0 : index
    %c0_73 = arith.constant 0 : index
    %190 = vector.load %arg3[%c0_72, %c0_73] : memref<128x512xbf16, #tpu.memory_space<vmem>>, vector<128x512xbf16>
    %cst_74 = arith.constant dense<0.000000e+00> : vector<8x512xf32>
    %191 = tpu.matmul %189, %190, %cst_74 {dimension_numbers = #tpu.dot_dimension_numbers<[1], [0], [0], [1], [0, 0, 1, 1], [], []>} : vector<8x128xbf16>, vector<128x512xbf16>, vector<8x512xf32> -> vector<8x512xf32>
    %192 = arith.addf %188, %191 : vector<8x512xf32>
    %193 = math.tanh %192 : vector<8x512xf32>
    %194 = vector.extract_strided_slice %193 {offsets = [0, 0], sizes = [8, 128], strides = [1, 1]} : vector<8x512xf32> to vector<8x128xf32>
    %cst_75 = arith.constant 1.000000e+00 : f32
    %195 = vector.broadcast %cst_75 : f32 to vector<8x128xf32>
    %196 = arith.addf %194, %195 : vector<8x128xf32>
    %cst_76 = arith.constant 5.000000e-01 : f32
    %197 = vector.broadcast %cst_76 : f32 to vector<8x128xf32>
    %198 = arith.mulf %197, %196 : vector<8x128xf32>
    %199 = vector.extract_strided_slice %193 {offsets = [0, 128], sizes = [8, 128], strides = [1, 1]} : vector<8x512xf32> to vector<8x128xf32>
    %cst_77 = arith.constant 1.000000e+00 : f32
    %200 = vector.broadcast %cst_77 : f32 to vector<8x128xf32>
    %201 = arith.addf %199, %200 : vector<8x128xf32>
    %cst_78 = arith.constant 5.000000e-01 : f32
    %202 = vector.broadcast %cst_78 : f32 to vector<8x128xf32>
    %203 = arith.mulf %202, %201 : vector<8x128xf32>
    %204 = vector.extract_strided_slice %193 {offsets = [0, 256], sizes = [8, 128], strides = [1, 1]} : vector<8x512xf32> to vector<8x128xf32>
    %205 = vector.extract_strided_slice %193 {offsets = [0, 384], sizes = [8, 128], strides = [1, 1]} : vector<8x512xf32> to vector<8x128xf32>
    %cst_79 = arith.constant 1.000000e+00 : f32
    %206 = vector.broadcast %cst_79 : f32 to vector<8x128xf32>
    %207 = arith.addf %205, %206 : vector<8x128xf32>
    %cst_80 = arith.constant 5.000000e-01 : f32
    %208 = vector.broadcast %cst_80 : f32 to vector<8x128xf32>
    %209 = arith.mulf %208, %207 : vector<8x128xf32>
    %210 = arith.mulf %203, %182 : vector<8x128xf32>
    %211 = arith.mulf %198, %204 : vector<8x128xf32>
    %212 = arith.addf %210, %211 : vector<8x128xf32>
    %213 = math.tanh %212 : vector<8x128xf32>
    %214 = arith.mulf %209, %213 : vector<8x128xf32>
    %c7_i32 = arith.constant 7 : i32
    %215 = arith.index_cast %c7_i32 : i32 to index
    %c0_81 = arith.constant 0 : index
    %c0_82 = arith.constant 0 : index
    %216 = vector.load %arg2[%215, %c0_81, %c0_82] : memref<8x8x512xbf16, #tpu.memory_space<vmem>>, vector<1x8x512xbf16>
    %217 = vector.shape_cast %216 : vector<1x8x512xbf16> to vector<8x512xbf16>
    %218 = arith.extf %217 : vector<8x512xbf16> to vector<8x512xf32>
    %219 = arith.truncf %214 : vector<8x128xf32> to vector<8x128xbf16>
    %c0_83 = arith.constant 0 : index
    %c0_84 = arith.constant 0 : index
    %220 = vector.load %arg3[%c0_83, %c0_84] : memref<128x512xbf16, #tpu.memory_space<vmem>>, vector<128x512xbf16>
    %cst_85 = arith.constant dense<0.000000e+00> : vector<8x512xf32>
    %221 = tpu.matmul %219, %220, %cst_85 {dimension_numbers = #tpu.dot_dimension_numbers<[1], [0], [0], [1], [0, 0, 1, 1], [], []>} : vector<8x128xbf16>, vector<128x512xbf16>, vector<8x512xf32> -> vector<8x512xf32>
    %222 = arith.addf %218, %221 : vector<8x512xf32>
    %223 = math.tanh %222 : vector<8x512xf32>
    %224 = vector.extract_strided_slice %223 {offsets = [0, 0], sizes = [8, 128], strides = [1, 1]} : vector<8x512xf32> to vector<8x128xf32>
    %cst_86 = arith.constant 1.000000e+00 : f32
    %225 = vector.broadcast %cst_86 : f32 to vector<8x128xf32>
    %226 = arith.addf %224, %225 : vector<8x128xf32>
    %cst_87 = arith.constant 5.000000e-01 : f32
    %227 = vector.broadcast %cst_87 : f32 to vector<8x128xf32>
    %228 = arith.mulf %227, %226 : vector<8x128xf32>
    %229 = vector.extract_strided_slice %223 {offsets = [0, 128], sizes = [8, 128], strides = [1, 1]} : vector<8x512xf32> to vector<8x128xf32>
    %cst_88 = arith.constant 1.000000e+00 : f32
    %230 = vector.broadcast %cst_88 : f32 to vector<8x128xf32>
    %231 = arith.addf %229, %230 : vector<8x128xf32>
    %cst_89 = arith.constant 5.000000e-01 : f32
    %232 = vector.broadcast %cst_89 : f32 to vector<8x128xf32>
    %233 = arith.mulf %232, %231 : vector<8x128xf32>
    %234 = vector.extract_strided_slice %223 {offsets = [0, 256], sizes = [8, 128], strides = [1, 1]} : vector<8x512xf32> to vector<8x128xf32>
    %235 = vector.extract_strided_slice %223 {offsets = [0, 384], sizes = [8, 128], strides = [1, 1]} : vector<8x512xf32> to vector<8x128xf32>
    %cst_90 = arith.constant 1.000000e+00 : f32
    %236 = vector.broadcast %cst_90 : f32 to vector<8x128xf32>
    %237 = arith.addf %235, %236 : vector<8x128xf32>
    %cst_91 = arith.constant 5.000000e-01 : f32
    %238 = vector.broadcast %cst_91 : f32 to vector<8x128xf32>
    %239 = arith.mulf %238, %237 : vector<8x128xf32>
    %240 = arith.mulf %233, %212 : vector<8x128xf32>
    %241 = arith.mulf %228, %234 : vector<8x128xf32>
    %242 = arith.addf %240, %241 : vector<8x128xf32>
    %243 = math.tanh %242 : vector<8x128xf32>
    %244 = arith.mulf %239, %243 : vector<8x128xf32>
    %c8_i32 = arith.constant 8 : i32
    %c0_92 = arith.constant 0 : index
    %c0_93 = arith.constant 0 : index
    %245 = vector.load %arg8[%c0_92, %c0_93] : memref<8x128xf32, #tpu.memory_space<vmem>>, vector<8x128xf32>
    tpu.vector_store %arg8[%c0_92, %c0_93], %244 {strides = array<i32>} : memref<8x128xf32, #tpu.memory_space<vmem>>, vector<8x128xf32>,
    %c0_94 = arith.constant 0 : index
    %c0_95 = arith.constant 0 : index
    %246 = vector.load %arg9[%c0_94, %c0_95] : memref<8x128xf32, #tpu.memory_space<vmem>>, vector<8x128xf32>
    tpu.vector_store %arg9[%c0_94, %c0_95], %242 {strides = array<i32>} : memref<8x128xf32, #tpu.memory_space<vmem>>, vector<8x128xf32>,
    %c0_i32_96 = arith.constant 0 : i32
    %247 = arith.cmpi eq, %arg1, %c0_i32_96 : i32
    %248 = arith.extui %247 : i1 to i32
    %c0_i32_97 = arith.constant 0 : i32
    %249 = arith.cmpi ne, %248, %c0_i32_97 : i32
    scf.if %249 {
      %c0_98 = arith.constant 0 : index
      %c0_99 = arith.constant 0 : index
      %250 = vector.load %arg4[%c0_98, %c0_99] : memref<128x4xf32, #tpu.memory_space<vmem>>, vector<128x4xf32>
      %cst_100 = arith.constant dense<0.000000e+00> : vector<8x4xf32>
      %251 = tpu.matmul %244, %250, %cst_100 {dimension_numbers = #tpu.dot_dimension_numbers<[1], [0], [0], [1], [0, 0, 1, 1], [], []>} : vector<8x128xf32>, vector<128x4xf32>, vector<8x4xf32> -> vector<8x4xf32>
      %c0_101 = arith.constant 0 : index
      %c0_102 = arith.constant 0 : index
      %252 = vector.load %arg5[%c0_101, %c0_102] : memref<1x4xf32, #tpu.memory_space<vmem>>, vector<1x4xf32>
      %253 = vector.broadcast %252 : vector<1x4xf32> to vector<8x4xf32>
      %254 = arith.addf %251, %253 : vector<8x4xf32>
      %c0_103 = arith.constant 0 : index
      %c0_104 = arith.constant 0 : index
      %255 = vector.load %arg6[%c0_103, %c0_104] : memref<8x4xf32, #tpu.memory_space<vmem>>, vector<8x4xf32>
      tpu.vector_store %arg6[%c0_103, %c0_104], %254 {strides = array<i32>} : memref<8x4xf32, #tpu.memory_space<vmem>>, vector<8x4xf32>,
      %cst_105 = arith.constant dense<0xFF800000> : vector<8xf32>
      %256 = vector.multi_reduction <maximumf>, %254, %cst_105 [1] : vector<8x4xf32> to vector<8xf32>
      %257 = vector.shape_cast %256 : vector<8xf32> to vector<8x1xf32>
      %258 = vector.broadcast %257 : vector<8x1xf32> to vector<8x4xf32>
      %259 = arith.subf %254, %258 : vector<8x4xf32>
      %260 = math.exp %259 : vector<8x4xf32>
      %cst_106 = arith.constant dense<0.000000e+00> : vector<8xf32>
      %261 = vector.multi_reduction <add>, %260, %cst_106 [1] : vector<8x4xf32> to vector<8xf32>
      %262 = vector.shape_cast %261 : vector<8xf32> to vector<8x1xf32>
      %263 = vector.broadcast %262 : vector<8x1xf32> to vector<8x4xf32>
      %264 = arith.divf %260, %263 : vector<8x4xf32>
      %c0_107 = arith.constant 0 : index
      %c0_108 = arith.constant 0 : index
      %265 = vector.load %arg7[%c0_107, %c0_108] : memref<8x4xf32, #tpu.memory_space<vmem>>, vector<8x4xf32>
      tpu.vector_store %arg7[%c0_107, %c0_108], %264 {strides = array<i32>} : memref<8x4xf32, #tpu.memory_space<vmem>>, vector<8x4xf32>,
    } else {
    }
    return
  }
  func.func @transform_0(%arg0: i32, %arg1: i32) -> (i32, i32, i32) {
    %c0_i32 = arith.constant 0 : i32
    %c0_i32_0 = arith.constant 0 : i32
    return %arg1, %arg0, %c0_i32 : i32, i32, i32
  }
  func.func @transform_1(%arg0: i32, %arg1: i32) -> (i32, i32) {
    %c0_i32 = arith.constant 0 : i32
    %c0_i32_0 = arith.constant 0 : i32
    %c0_i32_1 = arith.constant 0 : i32
    return %c0_i32, %c0_i32_0 : i32, i32
  }
  func.func @transform_2(%arg0: i32, %arg1: i32) -> (i32, i32) {
    %c0_i32 = arith.constant 0 : i32
    %c0_i32_0 = arith.constant 0 : i32
    %c0_i32_1 = arith.constant 0 : i32
    return %c0_i32, %c0_i32_0 : i32, i32
  }
  func.func @transform_3(%arg0: i32, %arg1: i32) -> (i32, i32) {
    %c0_i32 = arith.constant 0 : i32
    %c0_i32_0 = arith.constant 0 : i32
    %c0_i32_1 = arith.constant 0 : i32
    return %c0_i32, %c0_i32_0 : i32, i32
  }
  func.func @transform_4(%arg0: i32, %arg1: i32) -> (i32, i32) {
    %c0_i32 = arith.constant 0 : i32
    %c0_i32_0 = arith.constant 0 : i32
    return %arg0, %c0_i32 : i32, i32
  }
  func.func @transform_5(%arg0: i32, %arg1: i32) -> (i32, i32) {
    %c0_i32 = arith.constant 0 : i32
    %c0_i32_0 = arith.constant 0 : i32
    return %arg0, %c0_i32 : i32, i32
  }
}

</mosaic_0001>

<bundles_post_ra>
// kernel: lstm_policy_forward.1
= control target key start
LH: loop header
LB: loop body
LE: loop exit
PB: predicated region body
PF: predicated region fallthrough
CT: control target
= control target key end

     0   :  { %s1907_s0 = inlined_call_operand.vmem [shape: bf16[8,8,512], index: 0, kind: input, shape index: {}]   ;;  %s1908_s1 = inlined_call_operand.vmem [shape: bf16[128,512], index: 1, kind: input, shape index: {}]   ;;  %s1909_s2 = inlined_call_operand.vmem [shape: f32[128,4], index: 2, kind: input, shape index: {}]   ;;  %s1910_s3 = inlined_call_operand.vmem [shape: f32[1,4], index: 3, kind: input, shape index: {}]   ;;  %s1911_s4 = inlined_call_operand.hbm [shape: f32[8,4], index: 4, kind: output, shape index: {0}]   ;;  %s1912_s5 = inlined_call_operand.vmem [shape: f32[8,4], index: 5, kind: output, shape index: {1}]  }
   0x1   :  { %v1057_v0 = vld [vmem:[%s1908_s1 + $0xe0] sm:$0xf]  ;;  %v1115_v1 = vld [vmem:[%s1908_s1 + $0xec] sm:$0xf0]  ;;  %v1113_v2 = vld [vmem:[%s1908_s1 + $0xe4] sm:$0xf] }
   0x2   :  { %v1271_v3 = vor.u32 %v1115_v1, %v1057_v0  ;;  %v1059_v4 = vld [vmem:[%s1908_s1 + $0xf0] sm:$0xf0]  ;;  %v1065_v5 = vld [vmem:[%s1908_s1 + $0xe8] sm:$0xf]  ;;  %v1116_v6 = vld [vmem:[%s1908_s1 + $0xf4] sm:$0xf0] }
   0x3   :  { %v1282_v7 = vor.u32 %v1113_v2, %v1059_v4  ;;  %v1284_v8 = vor.u32 %v1116_v6, %v1065_v5  ;;  %v1114_v9 = vld [vmem:[%s1908_s1 + $0xec] sm:$0xf]  ;;  %v1067_v10 = vld [vmem:[%s1908_s1 + $0xf8] sm:$0xf0]  ;;  %v1041_v11 = vld [vmem:[%s1908_s1 + $0xc0] sm:$0xf] }
   0x4   :  { %227 = vmatpush.bf16.msra.mxu0 %v1271_v3  ;;  %v1296_v12 = vor.u32 %v1114_v9, %v1067_v10  ;;  %v1111_v13 = vld [vmem:[%s1908_s1 + $0xcc] sm:$0xf0]  ;;  %v1109_v14 = vld [vmem:[%s1908_s1 + $0xc4] sm:$0xf]  ;;  %v1043_v15 = vld [vmem:[%s1908_s1 + $0xd0] sm:$0xf0] }
   0x5   :  { %240 = vmatpush.bf16.msra.mxu1 %v1282_v7  ;;  %253 = vmatpush.bf16.msra.mxu2 %v1284_v8  ;;  %v1309_v16 = vor.u32 %v1111_v13, %v1041_v11  ;;  %v1311_v17 = vor.u32 %v1109_v14, %v1043_v15  ;;  %v1049_v18 = vld [vmem:[%s1908_s1 + $0xc8] sm:$0xf]  ;;  %v1112_v19 = vld [vmem:[%s1908_s1 + $0xd4] sm:$0xf0]  ;;  %v1110_v20 = vld [vmem:[%s1908_s1 + $0xcc] sm:$0xf] }
   0x6   :  { %266 = vmatpush.bf16.msra.mxu3 %v1296_v12  ;;  %v1323_v21 = vor.u32 %v1112_v19, %v1049_v18  ;;  %v1051_v22 = vld [vmem:[%s1908_s1 + $0xd8] sm:$0xf0]  ;;  %v1025_v23 = vld [vmem:[%s1908_s1 + $0xa0] sm:$0xf]  ;;  %v1107_v24 = vld [vmem:[%s1908_s1 + $0xac] sm:$0xf0] }
   0x7   :  { %v1334_v25 = vor.u32 %v1110_v20, %v1051_v22  ;;  %v1105_v26 = vld [vmem:[%s1908_s1 + $0xa4] sm:$0xf]  ;;  %v1027_v27 = vld [vmem:[%s1908_s1 + $0xb0] sm:$0xf0]  ;;  %v1033_v28 = vld [vmem:[%s1908_s1 + $0xa8] sm:$0xf]  ;;  %v1346_v29 = vor.u32 %v1107_v24, %v1025_v23 }
   0x8   :  { %228 = vmatpush.bf16.msra.mxu0 %v1309_v16  ;;  %v1108_v30 = vld [vmem:[%s1908_s1 + $0xb4] sm:$0xf0]  ;;  %v1106_v31 = vld [vmem:[%s1908_s1 + $0xac] sm:$0xf]  ;;  %v1035_v32 = vld [vmem:[%s1908_s1 + $0xb8] sm:$0xf0]  ;;  %v1359_v33 = vor.u32 %v1105_v26, %v1027_v27 }
   0x9   :  { %241 = vmatpush.bf16.msra.mxu1 %v1311_v17  ;;  %254 = vmatpush.bf16.msra.mxu2 %v1323_v21  ;;  %v1361_v34 = vor.u32 %v1108_v30, %v1033_v28  ;;  %v1009_v35 = vld [vmem:[%s1908_s1 + $0x80] sm:$0xf]  ;;  %v1103_v36 = vld [vmem:[%s1908_s1 + $0x8c] sm:$0xf0]  ;;  %v1101_v37 = vld [vmem:[%s1908_s1 + $0x84] sm:$0xf]  ;;  %v1373_v38 = vor.u32 %v1106_v31, %v1035_v32 }
   0xa   :  { %267 = vmatpush.bf16.msra.mxu3 %v1334_v25  ;;  %v1011_v39 = vld [vmem:[%s1908_s1 + $0x90] sm:$0xf0]  ;;  %v1017_v40 = vld [vmem:[%s1908_s1 + $0x88] sm:$0xf]  ;;  %v1104_v41 = vld [vmem:[%s1908_s1 + $0x94] sm:$0xf0]  ;;  %v1391_v44 = vor.u32 %v1103_v36, %v1009_v35 }
   0xb   :  { %v1102_v42 = vld [vmem:[%s1908_s1 + $0x8c] sm:$0xf]  ;;  %v1019_v43 = vld [vmem:[%s1908_s1 + $0x98] sm:$0xf0]  ;;  %v1395_v45 = vor.u32 %v1101_v37, %v1011_v39  ;;  %v1397_v46 = vor.u32 %v1104_v41, %v1017_v40  ;;  %v993_v47 = vld [vmem:[%s1908_s1 + $0x60] sm:$0xf] }
   0xc   :  { %229 = vmatpush.bf16.msra.mxu0 %v1346_v29  ;;  %v1099_v48 = vld [vmem:[%s1908_s1 + $0x6c] sm:$0xf0]  ;;  %v1097_v49 = vld [vmem:[%s1908_s1 + $0x64] sm:$0xf]  ;;  %v1409_v50 = vor.u32 %v1102_v42, %v1019_v43  ;;  %v995_v51 = vld [vmem:[%s1908_s1 + $0x70] sm:$0xf0] }
   0xd   :  { %242 = vmatpush.bf16.msra.mxu1 %v1359_v33  ;;  %255 = vmatpush.bf16.msra.mxu2 %v1361_v34  ;;  %v1001_v52 = vld [vmem:[%s1908_s1 + $0x68] sm:$0xf]  ;;  %v1100_v53 = vld [vmem:[%s1908_s1 + $0x74] sm:$0xf0]  ;;  %v1098_v54 = vld [vmem:[%s1908_s1 + $0x6c] sm:$0xf]  ;;  %v1427_v56 = vor.u32 %v1099_v48, %v993_v47  ;;  %v1431_v57 = vor.u32 %v1097_v49, %v995_v51 }
   0xe   :  { %268 = vmatpush.bf16.msra.mxu3 %v1373_v38  ;;  %v1003_v55 = vld [vmem:[%s1908_s1 + $0x78] sm:$0xf0]  ;;  %v1433_v58 = vor.u32 %v1100_v53, %v1001_v52  ;;  %v977_v59 = vld [vmem:[%s1908_s1 + $0x40] sm:$0xf]  ;;  %v1095_v60 = vld [vmem:[%s1908_s1 + $0x4c] sm:$0xf0] }
   0xf   :  { %v1093_v61 = vld [vmem:[%s1908_s1 + $0x44] sm:$0xf]  ;;  %v1445_v62 = vor.u32 %v1098_v54, %v1003_v55  ;;  %v979_v63 = vld [vmem:[%s1908_s1 + $0x50] sm:$0xf0]  ;;  %v985_v0 = vld [vmem:[%s1908_s1 + $0x48] sm:$0xf]  ;;  %v1463_v5 = vor.u32 %v1095_v60, %v977_v59 }
  0x10   :  { %230 = vmatpush.bf16.msra.mxu0 %v1391_v44  ;;  %v1096_v1 = vld [vmem:[%s1908_s1 + $0x54] sm:$0xf0]  ;;  %v1094_v2 = vld [vmem:[%s1908_s1 + $0x4c] sm:$0xf]  ;;  %v987_v4 = vld [vmem:[%s1908_s1 + $0x58] sm:$0xf0]  ;;  %v1470_v9 = vor.u32 %v1093_v61, %v979_v63 }
  0x11   :  { %243 = vmatpush.bf16.msra.mxu1 %v1395_v45  ;;  %256 = vmatpush.bf16.msra.mxu2 %v1397_v46  ;;  %v961_v6 = vld [vmem:[%s1908_s1 + $0x20] sm:$0xf]  ;;  %v1472_v10 = vor.u32 %v1096_v1, %v985_v0  ;;  %v1091_v11 = vld [vmem:[%s1908_s1 + $0x2c] sm:$0xf0]  ;;  %v1089_v13 = vld [vmem:[%s1908_s1 + $0x24] sm:$0xf]  ;;  %v1484_v15 = vor.u32 %v1094_v2, %v987_v4 }
  0x12   :  { %269 = vmatpush.bf16.msra.mxu3 %v1409_v50  ;;  %v963_v14 = vld [vmem:[%s1908_s1 + $0x30] sm:$0xf0]  ;;  %v969_v18 = vld [vmem:[%s1908_s1 + $0x28] sm:$0xf]  ;;  %v1092_v19 = vld [vmem:[%s1908_s1 + $0x34] sm:$0xf0] }
  0x13   :  { %v1090_v20 = vld [vmem:[%s1908_s1 + $0x2c] sm:$0xf]  ;;  %v971_v22 = vld [vmem:[%s1908_s1 + $0x38] sm:$0xf0] }
  0x14   :  { %231 = vmatpush.bf16.msra.mxu0 %v1427_v56 }
  0x15   :  { %244 = vmatpush.bf16.msra.mxu1 %v1431_v57  ;;  %257 = vmatpush.bf16.msra.mxu2 %v1433_v58 }
  0x16   :  { %270 = vmatpush.bf16.msra.mxu3 %v1445_v62 }
  0x17   :  { %11 = vsyncpa [#allocation5], 0  ;;  %v1499_v23 = vor.u32 %v1091_v11, %v961_v6  ;;  %v1503_v24 = vor.u32 %v1089_v13, %v963_v14  ;;  %v1505_v26 = vor.u32 %v1092_v19, %v969_v18  ;;  %v945_v27 = vld [vmem:[%s1908_s1] sm:$0xf]  ;;  %v1087_v28 = vld [vmem:[%s1908_s1 + $0xc] sm:$0xf0]  ;;  %v1517_v31 = vor.u32 %v1090_v20, %v971_v22 }
  0x18   :  { %232 = vmatpush.bf16.msra.mxu0 %v1463_v5  ;;  %v1085_v30 = vld [vmem:[%s1908_s1 + $0x4] sm:$0xf]  ;;  %v947_v32 = vld [vmem:[%s1908_s1 + $0x10] sm:$0xf0]  ;;  %v953_v35 = vld [vmem:[%s1908_s1 + $0x8] sm:$0xf]  ;;  %v1535_v40 = vor.u32 %v1087_v28, %v945_v27 }
  0x19   :  { %245 = vmatpush.bf16.msra.mxu1 %v1470_v9  ;;  %258 = vmatpush.bf16.msra.mxu2 %v1472_v10  ;;  %v1088_v36 = vld [vmem:[%s1908_s1 + $0x14] sm:$0xf0]  ;;  %v1086_v37 = vld [vmem:[%s1908_s1 + $0xc] sm:$0xf]  ;;  %v955_v39 = vld [vmem:[%s1908_s1 + $0x18] sm:$0xf0]  ;;  %v1539_v41 = vor.u32 %v1085_v30, %v947_v32 }
  0x1a   :  { %271 = vmatpush.bf16.msra.mxu3 %v1484_v15  ;;  %v1541_v42 = vor.u32 %v1088_v36, %v953_v35  ;;  %v1544_v43 = vor.u32 %v1086_v37, %v955_v39  ;;  %v1230_v47 = vmov 0.0|0.0   ;;  %v28_v48 = vld [vmem:[%s1907_s0] sm:$0xff]  ;;  %v29_v55 = vld [vmem:[%s1907_s0 + $0x8] sm:$0xff]  ;;  %vm896_vm0 = vcmask 31744   ;;  %s1231_s7 = smov [#allocation4]   ;;  %s930_s10 = sshll.u32 %s1911_s4, 4  ;;  %s931_s10 = int_to_ptr.hbm [resolvable:$true] %s930_s10 }
  0x1b   :  { %v30_v49 = vunpack.c.l.bf16 %v28_v48  ;;  %v31_v51 = vunpack.c.h.bf16 %v28_v48  ;;  %v32_v60 = vunpack.c.l.bf16 %v29_v55  ;;  %v33_v61 = vunpack.c.h.bf16 %v29_v55  ;;  %s928_s8 = sshll.u32 %s1231_s7, 4  ;;  %s929_s8 = int_to_ptr.vmem [resolvable:$true] %s928_s8 }
  0x1c   :  { %233 = vmatpush.bf16.msra.mxu0 %v1499_v23 }
  0x1d   :  { %246 = vmatpush.bf16.msra.mxu1 %v1503_v24  ;;  %259 = vmatpush.bf16.msra.mxu2 %v1505_v26 }
  0x1e   :  { %272 = vmatpush.bf16.msra.mxu3 %v1517_v31 }
  0x20   :  { %234 = vmatpush.bf16.msra.mxu0 %v1535_v40 }
  0x21   :  { %247 = vmatpush.bf16.msra.mxu1 %v1539_v41  ;;  %260 = vmatpush.bf16.msra.mxu2 %v1541_v42 }
  0x22   :  { %273 = vmatpush.bf16.msra.mxu3 %v1544_v43 }
  0x23   :  { %235 = vmatmul.bf16.vlgmr.msra.gmra.mxu0 %v1230_v47 }
  0x24   :  { %306 = vmatpush.bf16.msrb.mxu0 %v1271_v3  ;;  %248 = vmatmul.bf16.vlgmr.msra.gmra.mxu1 %v1230_v47 }
  0x25   :  { %319 = vmatpush.bf16.msrb.mxu1 %v1282_v7  ;;  %261 = vmatmul.bf16.vlgmr.msra.gmra.mxu2 %v1230_v47 }
  0x26   :  { %274 = vmatmul.bf16.vlgmr.msra.gmra.mxu3 %v1230_v47  ;;  %332 = vmatpush.bf16.msrb.mxu2 %v1284_v8 }
  0x27   :  { %345 = vmatpush.bf16.msrb.mxu3 %v1296_v12 }
  0x28   :  { %307 = vmatpush.bf16.msrb.mxu0 %v1309_v16 }
  0x29   :  { %320 = vmatpush.bf16.msrb.mxu1 %v1311_v17 }
  0x2a   :  { %333 = vmatpush.bf16.msrb.mxu2 %v1323_v21 }
  0x2b   :  { %346 = vmatpush.bf16.msrb.mxu3 %v1334_v25 }
  0x2c   :  { %308 = vmatpush.bf16.msrb.mxu0 %v1346_v29 }
  0x2d   :  { %321 = vmatpush.bf16.msrb.mxu1 %v1359_v33 }
  0x2e   :  { %334 = vmatpush.bf16.msrb.mxu2 %v1361_v34 }
  0x2f   :  { %347 = vmatpush.bf16.msrb.mxu3 %v1373_v38 }
  0x30   :  { %309 = vmatpush.bf16.msrb.mxu0 %v1391_v44 }
  0x31   :  { %322 = vmatpush.bf16.msrb.mxu1 %v1395_v45 }
  0x32   :  { %335 = vmatpush.bf16.msrb.mxu2 %v1397_v46 }
  0x33   :  { %348 = vmatpush.bf16.msrb.mxu3 %v1409_v50 }
  0x34   :  { %310 = vmatpush.bf16.msrb.mxu0 %v1427_v56 }
  0x35   :  { %323 = vmatpush.bf16.msrb.mxu1 %v1431_v57 }
  0x36   :  { %336 = vmatpush.bf16.msrb.mxu2 %v1433_v58 }
  0x37   :  { %349 = vmatpush.bf16.msrb.mxu3 %v1445_v62 }
  0x38   :  { %311 = vmatpush.bf16.msrb.mxu0 %v1463_v5 }
  0x39   :  { %324 = vmatpush.bf16.msrb.mxu1 %v1470_v9 }
  0x3a   :  { %337 = vmatpush.bf16.msrb.mxu2 %v1472_v10 }
  0x3b   :  { %350 = vmatpush.bf16.msrb.mxu3 %v1484_v15 }
  0x3c   :  { %312 = vmatpush.bf16.msrb.mxu0 %v1499_v23 }
  0x3d   :  { %325 = vmatpush.bf16.msrb.mxu1 %v1503_v24 }
  0x3e   :  { %338 = vmatpush.bf16.msrb.mxu2 %v1505_v26 }
  0x3f   :  { %351 = vmatpush.bf16.msrb.mxu3 %v1517_v31 }
  0x40   :  { %313 = vmatpush.bf16.msrb.mxu0 %v1535_v40 }
  0x41   :  { %326 = vmatpush.bf16.msrb.mxu1 %v1539_v41 }
  0x42   :  { %339 = vmatpush.bf16.msrb.mxu2 %v1541_v42 }
  0x43   :  { %352 = vmatpush.bf16.msrb.mxu3 %v1544_v43 }
  0x44   :  { %385 = vmatpush.bf16.msra.mxu0 %v1271_v3 }
  0x45   :  { %398 = vmatpush.bf16.msra.mxu1 %v1282_v7 }
  0x46   :  { %411 = vmatpush.bf16.msra.mxu2 %v1284_v8 }
  0x47   :  { %424 = vmatpush.bf16.msra.mxu3 %v1296_v12 }
  0x48   :  { %386 = vmatpush.bf16.msra.mxu0 %v1309_v16 }
  0x49   :  { %399 = vmatpush.bf16.msra.mxu1 %v1311_v17 }
  0x4a   :  { %412 = vmatpush.bf16.msra.mxu2 %v1323_v21 }
  0x4b   :  { %425 = vmatpush.bf16.msra.mxu3 %v1334_v25 }
  0x4c   :  { %387 = vmatpush.bf16.msra.mxu0 %v1346_v29 }
  0x4d   :  { %400 = vmatpush.bf16.msra.mxu1 %v1359_v33 }
  0x4e   :  { %413 = vmatpush.bf16.msra.mxu2 %v1361_v34 }
  0x4f   :  { %426 = vmatpush.bf16.msra.mxu3 %v1373_v38 }
  0x50   :  { %388 = vmatpush.bf16.msra.mxu0 %v1391_v44 }
  0x51   :  { %401 = vmatpush.bf16.msra.mxu1 %v1395_v45 }
  0x52   :  { %414 = vmatpush.bf16.msra.mxu2 %v1397_v46 }
  0x53   :  { %427 = vmatpush.bf16.msra.mxu3 %v1409_v50 }
  0x54   :  { %389 = vmatpush.bf16.msra.mxu0 %v1427_v56 }
  0x55   :  { %402 = vmatpush.bf16.msra.mxu1 %v1431_v57 }
  0x56   :  { %415 = vmatpush.bf16.msra.mxu2 %v1433_v58 }
  0x57   :  { %428 = vmatpush.bf16.msra.mxu3 %v1445_v62 }
  0x58   :  { %390 = vmatpush.bf16.msra.mxu0 %v1463_v5 }
  0x59   :  { %403 = vmatpush.bf16.msra.mxu1 %v1470_v9 }
  0x5a   :  { %416 = vmatpush.bf16.msra.mxu2 %v1472_v10 }
  0x5b   :  { %429 = vmatpush.bf16.msra.mxu3 %v1484_v15 }
  0x5c   :  { %391 = vmatpush.bf16.msra.mxu0 %v1499_v23 }
  0x5d   :  { %404 = vmatpush.bf16.msra.mxu1 %v1503_v24 }
  0x5e   :  { %417 = vmatpush.bf16.msra.mxu2 %v1505_v26 }
  0x5f   :  { %430 = vmatpush.bf16.msra.mxu3 %v1517_v31 }
  0x60   :  { %392 = vmatpush.bf16.msra.mxu0 %v1535_v40 }
  0x61   :  { %405 = vmatpush.bf16.msra.mxu1 %v1539_v41 }
  0x62   :  { %418 = vmatpush.bf16.msra.mxu2 %v1541_v42 }
  0x63   :  { %431 = vmatpush.bf16.msra.mxu3 %v1544_v43 }
  0xa0   :  { %v236_v52 = vpop.f32.mrf.mxu0 }
  0xa1   :  { %v279_v53 = vadd.f32 %v236_v52, %v30_v49  ;;  %v249_v54 = vpop.f32.mrf.mxu1 }
  0xa2   :  { %v280_v59 = vadd.f32 %v249_v54, %v31_v51  ;;  %v1071_v51 = vld [vmem:[%s1907_s0 + $0x10] sm:$0xff] }
  0xa3   :  { %1120 = vtanh.f32 %v279_v53  ;;  %v301_v52 = vunpack.c.l.bf16 %v1071_v51  ;;  %v302_v53 = vunpack.c.h.bf16 %v1071_v51 }
  0xa4   :  { %1122 = vtanh.f32 %v280_v59 }
  0xa8   :  { %v262_v63 = vpop.f32.mrf.mxu2  ;;  %v238_v2 = vpop.f32.mrf.mxu0 }
  0xa9   :  { %v281_v0 = vadd.f32 %v262_v63, %v32_v60  ;;  %v275_v1 = vpop.f32.mrf.mxu3  ;;  %v1121_v4 = vpop.eup %1120 }
  0xaa   :  { %v282_v6 = vadd.f32 %v275_v1, %v33_v61  ;;  %v251_v11 = vpop.f32.mrf.mxu1  ;;  %v1123_v13 = vpop.eup %1122  ;;  %v287_v14 = vadd.f32 1.0, %v1121_v4  ;;  %v1072_v61 = vld [vmem:[%s1907_s0 + $0x18] sm:$0xff] }
  0xab   :  { %1124 = vtanh.f32 %v281_v0  ;;  %v289_v18 = vadd.f32 1.0, %v1123_v13  ;;  %v303_v63 = vunpack.c.l.bf16 %v1072_v61  ;;  %v304_v0 = vunpack.c.h.bf16 %v1072_v61 }
  0xac   :  { %1126 = vtanh.f32 %v282_v6  ;;  %v288_v19 = vmul.f32 0.5, %v287_v14 }
  0xad   :  { %v290_v20 = vmul.f32 0.5, %v289_v18 }
  0xaf   :  { %v293_v22 = vmul.f32 0.0, %v290_v20 }
  0xb0   :  { %v264_v27 = vpop.f32.mrf.mxu2 }
  0xb1   :  { %v1125_v28 = vpop.eup %1124  ;;  %v277_v30 = vpop.f32.mrf.mxu3 }
  0xb2   :  { %v1127_v32 = vpop.eup %1126  ;;  %v294_v35 = vmul.f32 %v1125_v28, %v288_v19 }
  0xb3   :  { %v291_v37 = vadd.f32 1.0, %v1127_v32 }
  0xb4   :  { %v1620_v36 = vadd.f32 %v294_v35, %v293_v22 }
  0xb5   :  { %v292_v39 = vmul.f32 0.5, %v291_v37 }
  0xb6   :  { %1128 = vtanh.f32 %v1620_v36 }
  0xbc   :  { %v1129_v47 = vpop.eup %1128 }
  0xbd   :  { %v297_v48 = vmul.f32 %v1129_v47, %v292_v39 }
  0xbf   :  { %v305_v49 = vpack.c.bf16 %v297_v48, %v297_v48 }
  0xc1   :  { %314 = vmatmul.bf16.vlgmr.msrb.gmra.mxu0 %v305_v49  ;;  %327 = vmatmul.bf16.vlgmr.msrb.gmra.mxu1 %v305_v49 }
  0xc2   :  { %340 = vmatmul.bf16.vlgmr.msrb.gmra.mxu2 %v305_v49  ;;  %353 = vmatmul.bf16.vlgmr.msrb.gmra.mxu3 %v305_v49 }
  0xc3   :  { %464 = vmatpush.bf16.msrb.mxu0 %v1271_v3  ;;  %477 = vmatpush.bf16.msrb.mxu1 %v1282_v7 }
  0xc4   :  { %490 = vmatpush.bf16.msrb.mxu2 %v1284_v8  ;;  %503 = vmatpush.bf16.msrb.mxu3 %v1296_v12 }
  0xc7   :  { %465 = vmatpush.bf16.msrb.mxu0 %v1309_v16  ;;  %478 = vmatpush.bf16.msrb.mxu1 %v1311_v17 }
  0xc8   :  { %491 = vmatpush.bf16.msrb.mxu2 %v1323_v21  ;;  %504 = vmatpush.bf16.msrb.mxu3 %v1334_v25 }
  0xcb   :  { %466 = vmatpush.bf16.msrb.mxu0 %v1346_v29  ;;  %479 = vmatpush.bf16.msrb.mxu1 %v1359_v33 }
  0xcc   :  { %492 = vmatpush.bf16.msrb.mxu2 %v1361_v34  ;;  %505 = vmatpush.bf16.msrb.mxu3 %v1373_v38 }
  0xcf   :  { %467 = vmatpush.bf16.msrb.mxu0 %v1391_v44  ;;  %480 = vmatpush.bf16.msrb.mxu1 %v1395_v45 }
  0xd0   :  { %493 = vmatpush.bf16.msrb.mxu2 %v1397_v46  ;;  %506 = vmatpush.bf16.msrb.mxu3 %v1409_v50 }
  0xd3   :  { %468 = vmatpush.bf16.msrb.mxu0 %v1427_v56  ;;  %481 = vmatpush.bf16.msrb.mxu1 %v1431_v57 }
  0xd4   :  { %494 = vmatpush.bf16.msrb.mxu2 %v1433_v58  ;;  %507 = vmatpush.bf16.msrb.mxu3 %v1445_v62 }
  0xd7   :  { %469 = vmatpush.bf16.msrb.mxu0 %v1463_v5  ;;  %482 = vmatpush.bf16.msrb.mxu1 %v1470_v9 }
  0xd8   :  { %495 = vmatpush.bf16.msrb.mxu2 %v1472_v10  ;;  %508 = vmatpush.bf16.msrb.mxu3 %v1484_v15 }
  0xdb   :  { %470 = vmatpush.bf16.msrb.mxu0 %v1499_v23  ;;  %483 = vmatpush.bf16.msrb.mxu1 %v1503_v24 }
  0xdc   :  { %496 = vmatpush.bf16.msrb.mxu2 %v1505_v26  ;;  %509 = vmatpush.bf16.msrb.mxu3 %v1517_v31 }
  0xdf   :  { %471 = vmatpush.bf16.msrb.mxu0 %v1535_v40  ;;  %484 = vmatpush.bf16.msrb.mxu1 %v1539_v41 }
  0xe0   :  { %497 = vmatpush.bf16.msrb.mxu2 %v1541_v42  ;;  %510 = vmatpush.bf16.msrb.mxu3 %v1544_v43 }
 0x13e   :  { %v315_v54 = vpop.f32.mrf.mxu0  ;;  %v328_v55 = vpop.f32.mrf.mxu1 }
 0x13f   :  { %v358_v59 = vadd.f32 %v315_v54, %v301_v52  ;;  %v359_v60 = vadd.f32 %v328_v55, %v302_v53 }
 0x141   :  { %1130 = vtanh.f32 %v358_v59 }
 0x142   :  { %1132 = vtanh.f32 %v359_v60 }
 0x145   :  { %v341_v1 = vpop.f32.mrf.mxu2  ;;  %v354_v2 = vpop.f32.mrf.mxu3 }
 0x146   :  { %v360_v4 = vadd.f32 %v341_v1, %v303_v63  ;;  %v317_v6 = vpop.f32.mrf.mxu0  ;;  %v330_v11 = vpop.f32.mrf.mxu1  ;;  %v361_v14 = vadd.f32 %v354_v2, %v304_v0  ;;  %v1074_v0 = vld [vmem:[%s1907_s0 + $0x28] sm:$0xff] }
 0x147   :  { %v1131_v13 = vpop.eup %1130  ;;  %v382_v1 = vunpack.c.l.bf16 %v1074_v0  ;;  %v383_v2 = vunpack.c.h.bf16 %v1074_v0 }
 0x148   :  { %v1133_v18 = vpop.eup %1132  ;;  %1134 = vtanh.f32 %v360_v4  ;;  %v366_v19 = vadd.f32 1.0, %v1131_v13 }
 0x149   :  { %v368_v20 = vadd.f32 1.0, %v1133_v18  ;;  %1136 = vtanh.f32 %v361_v14 }
 0x14a   :  { %v367_v27 = vmul.f32 0.5, %v366_v19 }
 0x14b   :  { %v369_v22 = vmul.f32 0.5, %v368_v20 }
 0x14d   :  { %v343_v28 = vpop.f32.mrf.mxu2  ;;  %v356_v30 = vpop.f32.mrf.mxu3  ;;  %v372_v35 = vmul.f32 %v369_v22, %v1620_v36  ;;  %v1073_v36 = vld [vmem:[%s1907_s0 + $0x20] sm:$0xff] }
 0x14e   :  { %v1135_v32 = vpop.eup %1134  ;;  %v380_v54 = vunpack.c.l.bf16 %v1073_v36  ;;  %v381_v55 = vunpack.c.h.bf16 %v1073_v36 }
 0x14f   :  { %v373_v37 = vmul.f32 %v1135_v32, %v367_v27  ;;  %v1137_v39 = vpop.eup %1136 }
 0x150   :  { %v370_v48 = vadd.f32 1.0, %v1137_v39 }
 0x151   :  { %v1662_v47 = vadd.f32 %v373_v37, %v372_v35 }
 0x152   :  { %v371_v49 = vmul.f32 0.5, %v370_v48 }
 0x153   :  { %1138 = vtanh.f32 %v1662_v47 }
 0x159   :  { %v1139_v51 = vpop.eup %1138 }
 0x15a   :  { %v376_v52 = vmul.f32 %v1139_v51, %v371_v49 }
 0x15c   :  { %v384_v53 = vpack.c.bf16 %v376_v52, %v376_v52 }
 0x15e   :  { %393 = vmatmul.bf16.vlgmr.msra.gmra.mxu0 %v384_v53  ;;  %406 = vmatmul.bf16.vlgmr.msra.gmra.mxu1 %v384_v53 }
 0x15f   :  { %419 = vmatmul.bf16.vlgmr.msra.gmra.mxu2 %v384_v53  ;;  %432 = vmatmul.bf16.vlgmr.msra.gmra.mxu3 %v384_v53 }
 0x160   :  { %543 = vmatpush.bf16.msra.mxu0 %v1271_v3  ;;  %556 = vmatpush.bf16.msra.mxu1 %v1282_v7 }
 0x161   :  { %569 = vmatpush.bf16.msra.mxu2 %v1284_v8  ;;  %582 = vmatpush.bf16.msra.mxu3 %v1296_v12 }
 0x164   :  { %544 = vmatpush.bf16.msra.mxu0 %v1309_v16  ;;  %557 = vmatpush.bf16.msra.mxu1 %v1311_v17 }
 0x165   :  { %570 = vmatpush.bf16.msra.mxu2 %v1323_v21  ;;  %583 = vmatpush.bf16.msra.mxu3 %v1334_v25 }
 0x168   :  { %545 = vmatpush.bf16.msra.mxu0 %v1346_v29  ;;  %558 = vmatpush.bf16.msra.mxu1 %v1359_v33 }
 0x169   :  { %571 = vmatpush.bf16.msra.mxu2 %v1361_v34  ;;  %584 = vmatpush.bf16.msra.mxu3 %v1373_v38 }
 0x16c   :  { %546 = vmatpush.bf16.msra.mxu0 %v1391_v44  ;;  %559 = vmatpush.bf16.msra.mxu1 %v1395_v45 }
 0x16d   :  { %572 = vmatpush.bf16.msra.mxu2 %v1397_v46  ;;  %585 = vmatpush.bf16.msra.mxu3 %v1409_v50 }
 0x170   :  { %547 = vmatpush.bf16.msra.mxu0 %v1427_v56  ;;  %560 = vmatpush.bf16.msra.mxu1 %v1431_v57 }
 0x171   :  { %573 = vmatpush.bf16.msra.mxu2 %v1433_v58  ;;  %586 = vmatpush.bf16.msra.mxu3 %v1445_v62 }
 0x174   :  { %548 = vmatpush.bf16.msra.mxu0 %v1463_v5  ;;  %561 = vmatpush.bf16.msra.mxu1 %v1470_v9 }
 0x175   :  { %574 = vmatpush.bf16.msra.mxu2 %v1472_v10  ;;  %587 = vmatpush.bf16.msra.mxu3 %v1484_v15 }
 0x178   :  { %549 = vmatpush.bf16.msra.mxu0 %v1499_v23  ;;  %562 = vmatpush.bf16.msra.mxu1 %v1503_v24 }
 0x179   :  { %575 = vmatpush.bf16.msra.mxu2 %v1505_v26  ;;  %588 = vmatpush.bf16.msra.mxu3 %v1517_v31 }
 0x17c   :  { %550 = vmatpush.bf16.msra.mxu0 %v1535_v40  ;;  %563 = vmatpush.bf16.msra.mxu1 %v1539_v41 }
 0x17d   :  { %576 = vmatpush.bf16.msra.mxu2 %v1541_v42  ;;  %589 = vmatpush.bf16.msra.mxu3 %v1544_v43 }
 0x1db   :  { %v394_v59 = vpop.f32.mrf.mxu0  ;;  %v407_v60 = vpop.f32.mrf.mxu1 }
 0x1dc   :  { %v437_v61 = vadd.f32 %v394_v59, %v380_v54  ;;  %v438_v63 = vadd.f32 %v407_v60, %v381_v55 }
 0x1de   :  { %1140 = vtanh.f32 %v437_v61 }
 0x1df   :  { %1142 = vtanh.f32 %v438_v63 }
 0x1e2   :  { %v420_v4 = vpop.f32.mrf.mxu2  ;;  %v433_v6 = vpop.f32.mrf.mxu3 }
 0x1e3   :  { %v439_v11 = vadd.f32 %v420_v4, %v382_v1  ;;  %v396_v13 = vpop.f32.mrf.mxu0  ;;  %v409_v14 = vpop.f32.mrf.mxu1  ;;  %v440_v19 = vadd.f32 %v433_v6, %v383_v2  ;;  %v1076_v2 = vld [vmem:[%s1907_s0 + $0x38] sm:$0xff] }
 0x1e4   :  { %v1141_v18 = vpop.eup %1140  ;;  %v461_v4 = vunpack.c.l.bf16 %v1076_v2  ;;  %v462_v6 = vunpack.c.h.bf16 %v1076_v2 }
 0x1e5   :  { %v1143_v20 = vpop.eup %1142  ;;  %1144 = vtanh.f32 %v439_v11  ;;  %v445_v22 = vadd.f32 1.0, %v1141_v18 }
 0x1e6   :  { %v447_v27 = vadd.f32 1.0, %v1143_v20  ;;  %1146 = vtanh.f32 %v440_v19 }
 0x1e7   :  { %v446_v30 = vmul.f32 0.5, %v445_v22 }
 0x1e8   :  { %v448_v28 = vmul.f32 0.5, %v447_v27 }
 0x1ea   :  { %v422_v32 = vpop.f32.mrf.mxu2  ;;  %v435_v35 = vpop.f32.mrf.mxu3  ;;  %v451_v39 = vmul.f32 %v448_v28, %v1662_v47  ;;  %v1075_v47 = vld [vmem:[%s1907_s0 + $0x30] sm:$0xff] }
 0x1eb   :  { %v1145_v37 = vpop.eup %1144  ;;  %v459_v59 = vunpack.c.l.bf16 %v1075_v47  ;;  %v460_v60 = vunpack.c.h.bf16 %v1075_v47 }
 0x1ec   :  { %v452_v48 = vmul.f32 %v1145_v37, %v446_v30  ;;  %v1147_v49 = vpop.eup %1146 }
 0x1ed   :  { %v449_v52 = vadd.f32 1.0, %v1147_v49 }
 0x1ee   :  { %v1704_v51 = vadd.f32 %v452_v48, %v451_v39 }
 0x1ef   :  { %v450_v53 = vmul.f32 0.5, %v449_v52 }
 0x1f0   :  { %1148 = vtanh.f32 %v1704_v51 }
 0x1f6   :  { %v1149_v36 = vpop.eup %1148 }
 0x1f7   :  { %v455_v54 = vmul.f32 %v1149_v36, %v450_v53 }
 0x1f9   :  { %v463_v55 = vpack.c.bf16 %v455_v54, %v455_v54 }
 0x1fb   :  { %472 = vmatmul.bf16.vlgmr.msrb.gmra.mxu0 %v463_v55  ;;  %485 = vmatmul.bf16.vlgmr.msrb.gmra.mxu1 %v463_v55 }
 0x1fc   :  { %498 = vmatmul.bf16.vlgmr.msrb.gmra.mxu2 %v463_v55  ;;  %511 = vmatmul.bf16.vlgmr.msrb.gmra.mxu3 %v463_v55 }
 0x1fd   :  { %622 = vmatpush.bf16.msrb.mxu0 %v1271_v3  ;;  %635 = vmatpush.bf16.msrb.mxu1 %v1282_v7 }
 0x1fe   :  { %648 = vmatpush.bf16.msrb.mxu2 %v1284_v8  ;;  %661 = vmatpush.bf16.msrb.mxu3 %v1296_v12 }
 0x201   :  { %623 = vmatpush.bf16.msrb.mxu0 %v1309_v16  ;;  %636 = vmatpush.bf16.msrb.mxu1 %v1311_v17 }
 0x202   :  { %649 = vmatpush.bf16.msrb.mxu2 %v1323_v21  ;;  %662 = vmatpush.bf16.msrb.mxu3 %v1334_v25 }
 0x205   :  { %624 = vmatpush.bf16.msrb.mxu0 %v1346_v29  ;;  %637 = vmatpush.bf16.msrb.mxu1 %v1359_v33 }
 0x206   :  { %650 = vmatpush.bf16.msrb.mxu2 %v1361_v34  ;;  %663 = vmatpush.bf16.msrb.mxu3 %v1373_v38 }
 0x209   :  { %625 = vmatpush.bf16.msrb.mxu0 %v1391_v44  ;;  %638 = vmatpush.bf16.msrb.mxu1 %v1395_v45 }
 0x20a   :  { %651 = vmatpush.bf16.msrb.mxu2 %v1397_v46  ;;  %664 = vmatpush.bf16.msrb.mxu3 %v1409_v50 }
 0x20d   :  { %626 = vmatpush.bf16.msrb.mxu0 %v1427_v56  ;;  %639 = vmatpush.bf16.msrb.mxu1 %v1431_v57 }
 0x20e   :  { %652 = vmatpush.bf16.msrb.mxu2 %v1433_v58  ;;  %665 = vmatpush.bf16.msrb.mxu3 %v1445_v62 }
 0x211   :  { %627 = vmatpush.bf16.msrb.mxu0 %v1463_v5  ;;  %640 = vmatpush.bf16.msrb.mxu1 %v1470_v9 }
 0x212   :  { %653 = vmatpush.bf16.msrb.mxu2 %v1472_v10  ;;  %666 = vmatpush.bf16.msrb.mxu3 %v1484_v15 }
 0x215   :  { %628 = vmatpush.bf16.msrb.mxu0 %v1499_v23  ;;  %641 = vmatpush.bf16.msrb.mxu1 %v1503_v24 }
 0x216   :  { %654 = vmatpush.bf16.msrb.mxu2 %v1505_v26  ;;  %667 = vmatpush.bf16.msrb.mxu3 %v1517_v31 }
 0x219   :  { %629 = vmatpush.bf16.msrb.mxu0 %v1535_v40  ;;  %642 = vmatpush.bf16.msrb.mxu1 %v1539_v41 }
 0x21a   :  { %655 = vmatpush.bf16.msrb.mxu2 %v1541_v42  ;;  %668 = vmatpush.bf16.msrb.mxu3 %v1544_v43 }
 0x278   :  { %v473_v61 = vpop.f32.mrf.mxu0  ;;  %v486_v63 = vpop.f32.mrf.mxu1 }
 0x279   :  { %v516_v0 = vadd.f32 %v473_v61, %v459_v59  ;;  %v517_v1 = vadd.f32 %v486_v63, %v460_v60 }
 0x27b   :  { %1150 = vtanh.f32 %v516_v0 }
 0x27c   :  { %1152 = vtanh.f32 %v517_v1 }
 0x27f   :  { %v499_v11 = vpop.f32.mrf.mxu2  ;;  %v512_v13 = vpop.f32.mrf.mxu3 }
 0x280   :  { %v518_v14 = vadd.f32 %v499_v11, %v461_v4  ;;  %v475_v18 = vpop.f32.mrf.mxu0  ;;  %v488_v19 = vpop.f32.mrf.mxu1  ;;  %v519_v22 = vadd.f32 %v512_v13, %v462_v6  ;;  %v1078_v6 = vld [vmem:[%s1907_s0 + $0x48] sm:$0xff] }
 0x281   :  { %v1151_v20 = vpop.eup %1150  ;;  %v540_v11 = vunpack.c.l.bf16 %v1078_v6  ;;  %v541_v13 = vunpack.c.h.bf16 %v1078_v6 }
 0x282   :  { %v1153_v27 = vpop.eup %1152  ;;  %1154 = vtanh.f32 %v518_v14  ;;  %v524_v28 = vadd.f32 1.0, %v1151_v20 }
 0x283   :  { %v526_v30 = vadd.f32 1.0, %v1153_v27  ;;  %1156 = vtanh.f32 %v519_v22 }
 0x284   :  { %v525_v35 = vmul.f32 0.5, %v524_v28 }
 0x285   :  { %v527_v32 = vmul.f32 0.5, %v526_v30 }
 0x287   :  { %v501_v37 = vpop.f32.mrf.mxu2  ;;  %v514_v39 = vpop.f32.mrf.mxu3  ;;  %v530_v49 = vmul.f32 %v527_v32, %v1704_v51  ;;  %v1077_v51 = vld [vmem:[%s1907_s0 + $0x40] sm:$0xff] }
 0x288   :  { %v1155_v48 = vpop.eup %1154  ;;  %v538_v61 = vunpack.c.l.bf16 %v1077_v51  ;;  %v539_v63 = vunpack.c.h.bf16 %v1077_v51 }
 0x289   :  { %v531_v52 = vmul.f32 %v1155_v48, %v525_v35  ;;  %v1157_v53 = vpop.eup %1156 }
 0x28a   :  { %v528_v54 = vadd.f32 1.0, %v1157_v53 }
 0x28b   :  { %v1746_v36 = vadd.f32 %v531_v52, %v530_v49 }
 0x28c   :  { %v529_v55 = vmul.f32 0.5, %v528_v54 }
 0x28d   :  { %1158 = vtanh.f32 %v1746_v36 }
 0x293   :  { %v1159_v47 = vpop.eup %1158 }
 0x294   :  { %v534_v59 = vmul.f32 %v1159_v47, %v529_v55 }
 0x296   :  { %v542_v60 = vpack.c.bf16 %v534_v59, %v534_v59 }
 0x298   :  { %551 = vmatmul.bf16.vlgmr.msra.gmra.mxu0 %v542_v60  ;;  %564 = vmatmul.bf16.vlgmr.msra.gmra.mxu1 %v542_v60 }
 0x299   :  { %577 = vmatmul.bf16.vlgmr.msra.gmra.mxu2 %v542_v60  ;;  %590 = vmatmul.bf16.vlgmr.msra.gmra.mxu3 %v542_v60 }
 0x29a   :  { %701 = vmatpush.bf16.msra.mxu0 %v1271_v3  ;;  %714 = vmatpush.bf16.msra.mxu1 %v1282_v7 }
 0x29b   :  { %727 = vmatpush.bf16.msra.mxu2 %v1284_v8  ;;  %740 = vmatpush.bf16.msra.mxu3 %v1296_v12 }
 0x29e   :  { %702 = vmatpush.bf16.msra.mxu0 %v1309_v16  ;;  %715 = vmatpush.bf16.msra.mxu1 %v1311_v17 }
 0x29f   :  { %728 = vmatpush.bf16.msra.mxu2 %v1323_v21  ;;  %741 = vmatpush.bf16.msra.mxu3 %v1334_v25 }
 0x2a2   :  { %703 = vmatpush.bf16.msra.mxu0 %v1346_v29  ;;  %716 = vmatpush.bf16.msra.mxu1 %v1359_v33 }
 0x2a3   :  { %729 = vmatpush.bf16.msra.mxu2 %v1361_v34  ;;  %742 = vmatpush.bf16.msra.mxu3 %v1373_v38 }
 0x2a6   :  { %704 = vmatpush.bf16.msra.mxu0 %v1391_v44  ;;  %717 = vmatpush.bf16.msra.mxu1 %v1395_v45 }
 0x2a7   :  { %730 = vmatpush.bf16.msra.mxu2 %v1397_v46  ;;  %743 = vmatpush.bf16.msra.mxu3 %v1409_v50 }
 0x2aa   :  { %705 = vmatpush.bf16.msra.mxu0 %v1427_v56  ;;  %718 = vmatpush.bf16.msra.mxu1 %v1431_v57 }
 0x2ab   :  { %731 = vmatpush.bf16.msra.mxu2 %v1433_v58  ;;  %744 = vmatpush.bf16.msra.mxu3 %v1445_v62 }
 0x2ae   :  { %706 = vmatpush.bf16.msra.mxu0 %v1463_v5  ;;  %719 = vmatpush.bf16.msra.mxu1 %v1470_v9 }
 0x2af   :  { %732 = vmatpush.bf16.msra.mxu2 %v1472_v10  ;;  %745 = vmatpush.bf16.msra.mxu3 %v1484_v15 }
 0x2b2   :  { %707 = vmatpush.bf16.msra.mxu0 %v1499_v23  ;;  %720 = vmatpush.bf16.msra.mxu1 %v1503_v24 }
 0x2b3   :  { %733 = vmatpush.bf16.msra.mxu2 %v1505_v26  ;;  %746 = vmatpush.bf16.msra.mxu3 %v1517_v31 }
 0x2b6   :  { %708 = vmatpush.bf16.msra.mxu0 %v1535_v40  ;;  %721 = vmatpush.bf16.msra.mxu1 %v1539_v41 }
 0x2b7   :  { %734 = vmatpush.bf16.msra.mxu2 %v1541_v42  ;;  %747 = vmatpush.bf16.msra.mxu3 %v1544_v43 }
 0x315   :  { %v552_v0 = vpop.f32.mrf.mxu0  ;;  %v565_v1 = vpop.f32.mrf.mxu1 }
 0x316   :  { %v595_v2 = vadd.f32 %v552_v0, %v538_v61  ;;  %v596_v4 = vadd.f32 %v565_v1, %v539_v63  ;;  %v1081_v1 = vld [vmem:[%s1907_s0 + $0x60] sm:$0xff] }
 0x318   :  { %1160 = vtanh.f32 %v595_v2  ;;  %v696_v2 = vunpack.c.l.bf16 %v1081_v1 }
 0x319   :  { %1162 = vtanh.f32 %v596_v4  ;;  %v697_v4 = vunpack.c.h.bf16 %v1081_v1 }
 0x31c   :  { %v578_v14 = vpop.f32.mrf.mxu2  ;;  %v591_v18 = vpop.f32.mrf.mxu3 }
 0x31d   :  { %v597_v19 = vadd.f32 %v578_v14, %v540_v11  ;;  %v554_v20 = vpop.f32.mrf.mxu0  ;;  %v567_v22 = vpop.f32.mrf.mxu1  ;;  %v598_v28 = vadd.f32 %v591_v18, %v541_v13  ;;  %v1082_v18 = vld [vmem:[%s1907_s0 + $0x68] sm:$0xff] }
 0x31e   :  { %v1161_v27 = vpop.eup %1160  ;;  %v698_v20 = vunpack.c.l.bf16 %v1082_v18  ;;  %v699_v22 = vunpack.c.h.bf16 %v1082_v18 }
 0x31f   :  { %v1163_v30 = vpop.eup %1162  ;;  %1164 = vtanh.f32 %v597_v19  ;;  %v603_v32 = vadd.f32 1.0, %v1161_v27  ;;  %v871_v19 = vld [vmem:[%s1909_s2 + $0x78] sm:$0xff] }
 0x320   :  { %v605_v35 = vadd.f32 1.0, %v1163_v30  ;;  %1166 = vtanh.f32 %v598_v28 }
 0x321   :  { %v604_v39 = vmul.f32 0.5, %v603_v32 }
 0x322   :  { %v606_v37 = vmul.f32 0.5, %v605_v35 }
 0x324   :  { %v580_v48 = vpop.f32.mrf.mxu2  ;;  %v593_v49 = vpop.f32.mrf.mxu3  ;;  %v609_v53 = vmul.f32 %v606_v37, %v1746_v36 }
 0x325   :  { %v1165_v52 = vpop.eup %1164 }
 0x326   :  { %v610_v54 = vmul.f32 %v1165_v52, %v604_v39  ;;  %v1167_v55 = vpop.eup %1166 }
 0x327   :  { %v607_v59 = vadd.f32 1.0, %v1167_v55 }
 0x328   :  { %v1788_v47 = vadd.f32 %v610_v54, %v609_v53 }
 0x329   :  { %v608_v60 = vmul.f32 0.5, %v607_v59 }
 0x32a   :  { %1168 = vtanh.f32 %v1788_v47 }
 0x330   :  { %v1169_v51 = vpop.eup %1168 }
 0x331   :  { %v613_v61 = vmul.f32 %v1169_v51, %v608_v60 }
 0x333   :  { %v621_v63 = vpack.c.bf16 %v613_v61, %v613_v61 }
 0x335   :  { %630 = vmatmul.bf16.vlgmr.msrb.gmra.mxu0 %v621_v63  ;;  %643 = vmatmul.bf16.vlgmr.msrb.gmra.mxu1 %v621_v63 }
 0x336   :  { %656 = vmatmul.bf16.vlgmr.msrb.gmra.mxu2 %v621_v63  ;;  %669 = vmatmul.bf16.vlgmr.msrb.gmra.mxu3 %v621_v63 }
 0x337   :  { %780 = vmatpush.bf16.msrb.mxu0 %v1271_v3  ;;  %793 = vmatpush.bf16.msrb.mxu1 %v1282_v7  ;;  %v1079_v3 = vld [vmem:[%s1907_s0 + $0x50] sm:$0xff] }
 0x338   :  { %806 = vmatpush.bf16.msrb.mxu2 %v1284_v8  ;;  %819 = vmatpush.bf16.msrb.mxu3 %v1296_v12  ;;  %v617_v7 = vunpack.c.l.bf16 %v1079_v3  ;;  %v618_v8 = vunpack.c.h.bf16 %v1079_v3 }
 0x33b   :  { %781 = vmatpush.bf16.msrb.mxu0 %v1309_v16  ;;  %794 = vmatpush.bf16.msrb.mxu1 %v1311_v17 }
 0x33c   :  { %807 = vmatpush.bf16.msrb.mxu2 %v1323_v21  ;;  %820 = vmatpush.bf16.msrb.mxu3 %v1334_v25  ;;  %v1080_v25 = vld [vmem:[%s1907_s0 + $0x58] sm:$0xff] }
 0x33f   :  { %782 = vmatpush.bf16.msrb.mxu0 %v1346_v29  ;;  %795 = vmatpush.bf16.msrb.mxu1 %v1359_v33  ;;  %v619_v29 = vunpack.c.l.bf16 %v1080_v25  ;;  %v620_v33 = vunpack.c.h.bf16 %v1080_v25  ;;  %v868_v25 = vld [vmem:[%s1909_s2 + $0x60] sm:$0xff] }
 0x340   :  { %808 = vmatpush.bf16.msrb.mxu2 %v1361_v34  ;;  %821 = vmatpush.bf16.msrb.mxu3 %v1373_v38 }
 0x343   :  { %783 = vmatpush.bf16.msrb.mxu0 %v1391_v44  ;;  %796 = vmatpush.bf16.msrb.mxu1 %v1395_v45 }
 0x344   :  { %809 = vmatpush.bf16.msrb.mxu2 %v1397_v46  ;;  %822 = vmatpush.bf16.msrb.mxu3 %v1409_v50 }
 0x347   :  { %784 = vmatpush.bf16.msrb.mxu0 %v1427_v56  ;;  %797 = vmatpush.bf16.msrb.mxu1 %v1431_v57 }
 0x348   :  { %810 = vmatpush.bf16.msrb.mxu2 %v1433_v58  ;;  %823 = vmatpush.bf16.msrb.mxu3 %v1445_v62 }
 0x34b   :  { %785 = vmatpush.bf16.msrb.mxu0 %v1463_v5  ;;  %798 = vmatpush.bf16.msrb.mxu1 %v1470_v9 }
 0x34c   :  { %811 = vmatpush.bf16.msrb.mxu2 %v1472_v10  ;;  %824 = vmatpush.bf16.msrb.mxu3 %v1484_v15 }
 0x34f   :  { %786 = vmatpush.bf16.msrb.mxu0 %v1499_v23  ;;  %799 = vmatpush.bf16.msrb.mxu1 %v1503_v24 }
 0x350   :  { %812 = vmatpush.bf16.msrb.mxu2 %v1505_v26  ;;  %825 = vmatpush.bf16.msrb.mxu3 %v1517_v31 }
 0x353   :  { %787 = vmatpush.bf16.msrb.mxu0 %v1535_v40  ;;  %800 = vmatpush.bf16.msrb.mxu1 %v1539_v41 }
 0x354   :  { %813 = vmatpush.bf16.msrb.mxu2 %v1541_v42  ;;  %826 = vmatpush.bf16.msrb.mxu3 %v1544_v43 }
 0x3b2   :  { %v631_v12 = vpop.f32.mrf.mxu0  ;;  %v644_v16 = vpop.f32.mrf.mxu1 }
 0x3b3   :  { %v674_v17 = vadd.f32 %v631_v12, %v617_v7  ;;  %v675_v21 = vadd.f32 %v644_v16, %v618_v8 }
 0x3b5   :  { %1170 = vtanh.f32 %v674_v17  ;;  %v870_v17 = vld [vmem:[%s1909_s2 + $0x70] sm:$0xff] }
 0x3b6   :  { %1172 = vtanh.f32 %v675_v21  ;;  %v869_v21 = vld [vmem:[%s1909_s2 + $0x68] sm:$0xff] }
 0x3b9   :  { %v657_v34 = vpop.f32.mrf.mxu2  ;;  %v670_v38 = vpop.f32.mrf.mxu3 }
 0x3ba   :  { %v676_v44 = vadd.f32 %v657_v34, %v619_v29  ;;  %v633_v45 = vpop.f32.mrf.mxu0  ;;  %v646_v46 = vpop.f32.mrf.mxu1  ;;  %v677_v56 = vadd.f32 %v670_v38, %v620_v33  ;;  %v867_v29 = vld [vmem:[%s1909_s2 + $0x58] sm:$0xff]  ;;  %v866_v33 = vld [vmem:[%s1909_s2 + $0x50] sm:$0xff]  ;;  %v865_v34 = vld [vmem:[%s1909_s2 + $0x48] sm:$0xff] }
 0x3bb   :  { %v1171_v50 = vpop.eup %1170  ;;  %v864_v38 = vld [vmem:[%s1909_s2 + $0x40] sm:$0xff]  ;;  %v862_v45 = vld [vmem:[%s1909_s2 + $0x30] sm:$0xff]  ;;  %v861_v46 = vld [vmem:[%s1909_s2 + $0x28] sm:$0xff] }
 0x3bc   :  { %v1173_v57 = vpop.eup %1172  ;;  %1174 = vtanh.f32 %v676_v44  ;;  %v682_v58 = vadd.f32 1.0, %v1171_v50  ;;  %v863_v44 = vld [vmem:[%s1909_s2 + $0x38] sm:$0xff]  ;;  %v860_v50 = vld [vmem:[%s1909_s2 + $0x20] sm:$0xff] }
 0x3bd   :  { %v684_v62 = vadd.f32 1.0, %v1173_v57  ;;  %1176 = vtanh.f32 %v677_v56  ;;  %v859_v56 = vld [vmem:[%s1909_s2 + $0x18] sm:$0xff]  ;;  %v858_v57 = vld [vmem:[%s1909_s2 + $0x10] sm:$0xff] }
 0x3be   :  { %v683_v9 = vmul.f32 0.5, %v682_v58  ;;  %v1083_v58 = vld [vmem:[%s1907_s0 + $0x70] sm:$0xff] }
 0x3bf   :  { %v685_v5 = vmul.f32 0.5, %v684_v62  ;;  %v857_v62 = vld [vmem:[%s1909_s2 + $0x8] sm:$0xff] }
 0x3c1   :  { %v659_v10 = vpop.f32.mrf.mxu2  ;;  %v672_v15 = vpop.f32.mrf.mxu3  ;;  %v688_v24 = vmul.f32 %v685_v5, %v1788_v47  ;;  %v856_v5 = vld [vmem:[%s1909_s2] sm:$0xff] }
 0x3c2   :  { %v1175_v23 = vpop.eup %1174  ;;  %v776_v10 = vunpack.c.h.bf16 %v1083_v58 }
 0x3c3   :  { %v689_v26 = vmul.f32 %v1175_v23, %v683_v9  ;;  %v1177_v31 = vpop.eup %1176  ;;  %v775_v9 = vunpack.c.l.bf16 %v1083_v58 }
 0x3c4   :  { %v686_v41 = vadd.f32 1.0, %v1177_v31  ;;  %v1084_v31 = vld [vmem:[%s1907_s0 + $0x78] sm:$0xff] }
 0x3c5   :  { %v690_v40 = vadd.f32 %v689_v26, %v688_v24 }
 0x3c6   :  { %v687_v42 = vmul.f32 0.5, %v686_v41  ;;  %v778_v41 = vunpack.c.h.bf16 %v1084_v31 }
 0x3c7   :  { %1178 = vtanh.f32 %v690_v40 }
 0x3cd   :  { %v1179_v43 = vpop.eup %1178 }
 0x3ce   :  { %v692_v36 = vmul.f32 %v1179_v43, %v687_v42 }
 0x3d0   :  { %v700_v0 = vpack.c.bf16 %v692_v36, %v692_v36 }
 0x3d2   :  { %709 = vmatmul.bf16.vlgmr.msra.gmra.mxu0 %v700_v0  ;;  %722 = vmatmul.bf16.vlgmr.msra.gmra.mxu1 %v700_v0 }
 0x3d3   :  { %735 = vmatmul.bf16.vlgmr.msra.gmra.mxu2 %v700_v0  ;;  %748 = vmatmul.bf16.vlgmr.msra.gmra.mxu3 %v700_v0 }
 0x3d4   :  { %876 = vmatpush.msra.mxu0 %v871_v19 }
 0x3d6   :  { %877 = vmatpush.msra.mxu0 %v870_v17 }
 0x3d8   :  { %878 = vmatpush.msra.mxu0 %v869_v21 }
 0x3da   :  { %879 = vmatpush.msra.mxu0 %v868_v25 }
 0x3dc   :  { %880 = vmatpush.msra.mxu0 %v867_v29 }
 0x3de   :  { %881 = vmatpush.msra.mxu0 %v866_v33 }
 0x3e0   :  { %882 = vmatpush.msra.mxu0 %v865_v34 }
 0x3e2   :  { %883 = vmatpush.msra.mxu0 %v864_v38 }
 0x3e4   :  { %884 = vmatpush.msra.mxu0 %v863_v44 }
 0x3e6   :  { %885 = vmatpush.msra.mxu0 %v862_v45 }
 0x3e8   :  { %886 = vmatpush.msra.mxu0 %v861_v46 }
 0x3ea   :  { %887 = vmatpush.msra.mxu0 %v860_v50 }
 0x3ec   :  { %888 = vmatpush.msra.mxu0 %v859_v56 }
 0x3ee   :  { %889 = vmatpush.msra.mxu0 %v858_v57 }
 0x3f0   :  { %890 = vmatpush.msra.mxu0 %v857_v62 }
 0x3f2   :  { %891 = vmatpush.msra.mxu0 %v856_v5 }
 0x44f   :  { %v710_v6 = vpop.f32.mrf.mxu0  ;;  %v723_v11 = vpop.f32.mrf.mxu1 }
 0x450   :  { %v753_v13 = vadd.f32 %v710_v6, %v696_v2  ;;  %v754_v14 = vadd.f32 %v723_v11, %v697_v4 }
 0x452   :  { %1180 = vtanh.f32 %v753_v13 }
 0x453   :  { %1182 = vtanh.f32 %v754_v14 }
 0x456   :  { %v736_v27 = vpop.f32.mrf.mxu2  ;;  %v749_v28 = vpop.f32.mrf.mxu3 }
 0x457   :  { %v755_v30 = vadd.f32 %v736_v27, %v698_v20  ;;  %v712_v32 = vpop.f32.mrf.mxu0  ;;  %v725_v35 = vpop.f32.mrf.mxu1  ;;  %v756_v39 = vadd.f32 %v749_v28, %v699_v22 }
 0x458   :  { %v1181_v37 = vpop.eup %1180 }
 0x459   :  { %v1183_v48 = vpop.eup %1182  ;;  %1184 = vtanh.f32 %v755_v30  ;;  %v761_v49 = vadd.f32 1.0, %v1181_v37 }
 0x45a   :  { %v763_v52 = vadd.f32 1.0, %v1183_v48  ;;  %1186 = vtanh.f32 %v756_v39 }
 0x45b   :  { %v762_v54 = vmul.f32 0.5, %v761_v49  ;;  %v1119_v49 = vld [vmem:[%s1910_s3] ss:$0 sm:$0xff] }
 0x45c   :  { %v764_v53 = vmul.f32 0.5, %v763_v52 }
 0x45e   :  { %v738_v55 = vpop.f32.mrf.mxu2  ;;  %v751_v47 = vpop.f32.mrf.mxu3  ;;  %v767_v60 = vmul.f32 %v764_v53, %v690_v40  ;;  %v777_v40 = vunpack.c.l.bf16 %v1084_v31 }
 0x45f   :  { %v1185_v59 = vpop.eup %1184 }
 0x460   :  { %v768_v51 = vmul.f32 %v1185_v59, %v762_v54  ;;  %v1187_v61 = vpop.eup %1186 }
 0x461   :  { %v765_v3 = vadd.f32 1.0, %v1187_v61 }
 0x462   :  { %v1839_v63 = vadd.f32 %v768_v51, %v767_v60 }
 0x463   :  { %v766_v7 = vmul.f32 0.5, %v765_v3 }
 0x464   :  { %1188 = vtanh.f32 %v1839_v63 }
 0x46a   :  { %v1189_v8 = vpop.eup %1188 }
 0x46b   :  { %v771_v12 = vmul.f32 %v1189_v8, %v766_v7 }
 0x46d   :  { %v779_v16 = vpack.c.bf16 %v771_v12, %v771_v12 }
 0x46f   :  { %788 = vmatmul.bf16.vlgmr.msrb.gmra.mxu0 %v779_v16  ;;  %801 = vmatmul.bf16.vlgmr.msrb.gmra.mxu1 %v779_v16 }
 0x470   :  { %814 = vmatmul.bf16.vlgmr.msrb.gmra.mxu2 %v779_v16  ;;  %827 = vmatmul.bf16.vlgmr.msrb.gmra.mxu3 %v779_v16 }
 0x4ec   :  { %v789_v15 = vpop.f32.mrf.mxu0  ;;  %v802_v23 = vpop.f32.mrf.mxu1 }
 0x4ed   :  { %v832_v24 = vadd.f32 %v789_v15, %v775_v9  ;;  %v833_v26 = vadd.f32 %v802_v23, %v776_v10 }
 0x4ef   :  { %1190 = vtanh.f32 %v832_v24 }
 0x4f0   :  { %1192 = vtanh.f32 %v833_v26 }
 0x4f3   :  { %v815_v42 = vpop.f32.mrf.mxu2  ;;  %v828_v43 = vpop.f32.mrf.mxu3 }
 0x4f4   :  { %v834_v36 = vadd.f32 %v815_v42, %v777_v40  ;;  %v791_v0 = vpop.f32.mrf.mxu0  ;;  %v804_v1 = vpop.f32.mrf.mxu1  ;;  %v835_v4 = vadd.f32 %v828_v43, %v778_v41 }
 0x4f5   :  { %v1191_v2 = vpop.eup %1190 }
 0x4f6   :  { %v1193_v6 = vpop.eup %1192  ;;  %1194 = vtanh.f32 %v834_v36  ;;  %v840_v11 = vadd.f32 1.0, %v1191_v2 }
 0x4f7   :  { %v842_v13 = vadd.f32 1.0, %v1193_v6  ;;  %1196 = vtanh.f32 %v835_v4 }
 0x4f8   :  { %v841_v18 = vmul.f32 0.5, %v840_v11 }
 0x4f9   :  { %v843_v14 = vmul.f32 0.5, %v842_v13 }
 0x4fb   :  { %v817_v19 = vpop.f32.mrf.mxu2  ;;  %v830_v20 = vpop.f32.mrf.mxu3  ;;  %v846_v27 = vmul.f32 %v843_v14, %v1839_v63 }
 0x4fc   :  { %v1195_v22 = vpop.eup %1194 }
 0x4fd   :  { %v847_v28 = vmul.f32 %v1195_v22, %v841_v18  ;;  %v1197_v30 = vpop.eup %1196 }
 0x4fe   :  { %v844_v35 = vadd.f32 1.0, %v1197_v30 }
 0x4ff   :  { %v848_v32 = vadd.f32 %v847_v28, %v846_v27 }
 0x500   :  { %v845_v37 = vmul.f32 0.5, %v844_v35 }
 0x501   :  { %1198 = vtanh.f32 %v848_v32 }
 0x507   :  { %v1199_v39 = vpop.eup %1198 }
 0x508   :  { %v850_v48 = vmul.f32 %v1199_v39, %v845_v37 }
 0x50a   :  { %892 = vmatmul.f32.vlgmr.msra.gmra.mxu0 %v850_v48 }
 0x587   :  { %v893_v52 = vpop.f32.mrf.mxu0 }
 0x588   :  { %v894_v53 = vadd.f32 %v1119_v49, %v893_v52 }
 0x58a   :  { %v898_v54 = vsel %vm896_vm0, %v894_v53, -inf  ;;  %897 = vst.msk [vmem:[#allocation4] sm:$0xff] %vm896_vm0, %v894_v53 }
 0x58b   :  { %899 = vmax.xlane.f32.xlu0 %v898_v54  ;;  %933 = dma.vmem_to_hbm [thread:$0]  %s929_s8, 128, %s931_s10, [#allocation5]  }
 0x5fe   :  { %v900_v55 = vpop.xlane.xlu0 %899 }
 0x5ff   :  { %v901_v47 = vsub.f32 %v894_v53, %v900_v55 }
 0x601   :  { %v902_v59 = vmul.f32 1.442695, %v901_v47 }
 0x603   :  { %1200 = vpow2.f32 %v902_v59 }
 0x609   :  { %v1201_v60 = vpop.eup %1200 }
 0x60a   :  { %v904_v51 = vsel %vm896_vm0, %v1201_v60, 0.0 }
 0x60b   :  { %905 = vadd.xlane.f32.xlu0 %v904_v51 }
 0x67e   :  { %v906_v61 = vpop.xlane.xlu0 %905 }
 0x67f   :  { %1202 = vrcp.f32 %v906_v61  ;;  %v918_v8 = vand.u32 2147483648, %v906_v61  ;;  %v916_v16 = vand.u32 2147483647, %v906_v61  ;;  %vm912_vm2 = vweird.f32 %v906_v61 }
 0x681   :  { %v919_v21 = vor.u32 1.1754944e-38, %v918_v8  ;;  %vm917_vm4 = vcmp.eq.f32.partialorder %v916_v16, 8.507059e+37 }
 0x685   :  { %v1203_v63 = vpop.eup %1202 }
 0x686   :  { %v908_v3 = vmul.f32 %v1203_v63, %v906_v61  ;;  %vm913_vm1 = vweird.f32 %v1203_v63 }
 0x687   :  { %vm914_vm3 = vmor %vm912_vm2, %vm913_vm1 }
 0x688   :  { %v909_v7 = vsub.f32 1.0, %v908_v3 }
 0x68a   :  { %v910_v12 = vmul.f32 %v1203_v63, %v909_v7 }
 0x68c   :  { %v911_v17 = vadd.f32 %v1203_v63, %v910_v12 }
 0x68e   :  { %v915_v25 = vsel %vm914_vm3, %v1203_v63, %v911_v17 }
 0x68f   :  { %v920_v29 = vsel %vm917_vm4, %v919_v21, %v915_v25 }
 0x690   :  { %v921_v33 = vmul.f32 %v1201_v60, %v920_v29 }
 0x692   :  { %922 = vst.msk [vmem:[%s1912_s5] sm:$0xff] %vm896_vm0, %v921_v33 }
 0x693   :  { %1228 = dma.done.wait [#allocation5], 128  }
 0x694   :  { %1229 = vsyncadd [#allocation5], 4294967168 }
 0x695   :  { %942 = vsyncpa [#allocation5], 1 }

</bundles_post_ra>
